<compile_context>
chip_gen: v7x
topology: tpu7x:2x2x1
jax: 0.10.0
libtpu: 0.0.40
codegen_flags: <defaults>
</compile_context>

<pallas_src>
from typing import NamedTuple

import jax
import jax.numpy as jnp
from jax.experimental import pallas as pl
from jax.experimental.pallas import tpu as pltpu


def _round_up(n: int, m: int) -> int:
    return ((n + m - 1) // m) * m


class SimpleNNParams(NamedTuple):
    w1: jax.Array  # (In, H_p)   bfloat16   (padded along H, zero cols)
    b1: jax.Array  # (1,  H_p)   float32
    w2: jax.Array  # (H_p, Out_p) bfloat16  (padded along H rows / Out cols)
    b2: jax.Array  # (1,  Out_p) float32


def prepare_params(w1, b1, w2, b2) -> SimpleNNParams:
    """One-time setup: pad H/Out to multiples of 128, cast weights to bf16.

    w1 : (In, H)   float32   (transposed vs PyTorch's (H, In))
    b1 : (H,)      float32
    w2 : (H, Out)  float32   (transposed vs PyTorch's (Out, H))
    b2 : (Out,)    float32
    """
    In, H = w1.shape
    Out = w2.shape[1]
    H_p = _round_up(H, 128)
    Out_p = _round_up(Out, 128)
    w1_p = jnp.pad(w1, ((0, 0), (0, H_p - H))).astype(jnp.bfloat16)
    w2_p = jnp.pad(w2, ((0, H_p - H), (0, Out_p - Out))).astype(jnp.bfloat16)
    b1_p = jnp.pad(b1, (0, H_p - H)).reshape(1, H_p).astype(jnp.float32)
    b2_p = jnp.pad(b2, (0, Out_p - Out)).reshape(1, Out_p).astype(jnp.float32)
    return SimpleNNParams(w1_p, b1_p, w2_p, b2_p)


def _choose_batch_tiling(B: int, batch_tile: int):
    """Pick (bt, B_p): batch tile and padded batch length."""
    batch_tile = _round_up(max(batch_tile, 128), 128)
    B8 = _round_up(max(B, 1), 8)
    if B8 <= batch_tile:
        if B8 >= 32:
            # Two tiles so v7x's second TensorCore gets work (grid axis is
            # "parallel"); tiles only need 8-row (sublane) alignment.
            bt = _round_up(-(-B8 // 2), 8)
            return bt, 2 * bt
        # Tiny batch: single minimal tile, no forced 128-row padding.
        return B8, B8
    # Large batch: multiples of 128 up to batch_tile, minimizing last-tile
    # padding waste (ties -> larger tile to amortize ~0.35us per-step cost).
    best_bt, best_pad = None, None
    for bt in range(128, batch_tile + 1, 128):
        pad = _round_up(B, bt) - B
        if best_pad is None or pad < best_pad or (pad == best_pad and bt > best_bt):
            best_bt, best_pad = bt, pad
    return best_bt, _round_up(B, best_bt)


def mlp_kernel(x_ref, w1_ref, b1_ref, w2_ref, b2_ref, o_ref):
    # Cast the f32 x tile to bf16 in-VMEM (saves a whole HBM pass vs a
    # wrapper-side cast); fc1 accumulates in f32 on the MXU.
    xb = x_ref[...].astype(jnp.bfloat16)
    h = jnp.dot(xb, w1_ref[...], preferred_element_type=jnp.float32)
    # Bias + ReLU in f32 (portable to v5e, which has no bf16 VPU).
    h = jnp.maximum(h + b1_ref[...], 0.0)
    # fc2: bf16 operand for the MXU, f32 accumulation.
    out = jnp.dot(h.astype(jnp.bfloat16), w2_ref[...],
                  preferred_element_type=jnp.float32)
    o_ref[...] = (out + b2_ref[...]).astype(o_ref.dtype)


def simple_nn_forward(x, params: SimpleNNParams, out_size: int, *,
                      batch_tile: int = 512):
    """Fused forward of SimpleNN: relu(x @ w1 + b1) @ w2 + b2.

    x      : (B, In) float32 (unpadded)
    params : output of prepare_params (padded bf16 weights, f32 biases)
    returns (B, out_size) float32
    """
    B, In = x.shape
    assert params.w1.shape[0] == In, "input_size mismatch with prepared params"
    H_p = params.w1.shape[1]
    Out_p = params.w2.shape[1]

    bt, B_p = _choose_batch_tiling(B, batch_tile)
    # Only the batch dim may need padding (f32, no dtype copy); In stays the
    # full-dim block (400), H/Out were padded once at setup.
    x_p = x if B_p == B else jnp.pad(x, ((0, B_p - B), (0, 0)))

    grid = (B_p // bt,)

    cost = pl.CostEstimate(
        flops=2 * B_p * (In * H_p + H_p * Out_p),
        transcendentals=0,
        bytes_accessed=(B_p * In * 4 + In * H_p * 2 + H_p * 4
                        + H_p * Out_p * 2 + Out_p * 4 + B_p * Out_p * 4),
    )

    out_padded = pl.pallas_call(
        mlp_kernel,
        out_shape=jax.ShapeDtypeStruct((B_p, Out_p), jnp.float32),
        grid_spec=pltpu.PrefetchScalarGridSpec(
            num_scalar_prefetch=0,
            grid=grid,
            in_specs=[
                # x tiles stream over the batch grid axis (f32, unpadded In).
                pl.BlockSpec((bt, In), lambda i: (i, 0)),
                # Weights / biases: constant block index -> VMEM-resident,
                # DMA'd from HBM exactly once per call.
                pl.BlockSpec((In, H_p), lambda i: (0, 0)),
                pl.BlockSpec((1, H_p), lambda i: (0, 0)),
                pl.BlockSpec((H_p, Out_p), lambda i: (0, 0)),
                pl.BlockSpec((1, Out_p), lambda i: (0, 0)),
            ],
            out_specs=pl.BlockSpec((bt, Out_p), lambda i: (i, 0)),
        ),
        compiler_params=pltpu.CompilerParams(
            # Batch tiles are independent -> shard across TCs (v7x megacore).
            dimension_semantics=("parallel",),
            # ~8 MiB used at bt=512 (see header math); 32 MiB leaves headroom
            # and stays well under v7x's 64 MiB physical VMEM.
            vmem_limit_bytes=32 * 1024 * 1024,
        ),
        cost_estimate=cost,
    )(x_p, params.w1, params.b1, params.w2, params.b2)

    return out_padded[:B, :out_size]


def init_params(key, input_size, hidden_size, out_size):
    """PyTorch-style uniform(-1/sqrt(fan_in), 1/sqrt(fan_in)) init."""
    k1, k2, k3, k4 = jax.random.split(key, 4)
    bound1 = 1.0 / jnp.sqrt(jnp.float32(input_size))
    bound2 = 1.0 / jnp.sqrt(jnp.float32(hidden_size))
    # Stored as (in, out) so the kernel can do x @ w directly.
    w1 = jax.random.uniform(k1, (input_size, hidden_size), jnp.float32,
                            -bound1, bound1)
    b1 = jax.random.uniform(k2, (hidden_size,), jnp.float32, -bound1, bound1)
    w2 = jax.random.uniform(k3, (hidden_size, out_size), jnp.float32,
                            -bound2, bound2)
    b2 = jax.random.uniform(k4, (out_size,), jnp.float32, -bound2, bound2)
    return w1, b1, w2, b2


if __name__ == "__main__":
    # Real module dims (input_size=400, hidden_size=1000) with a small batch
    # and ragged out_size -- exercises the padding + tiling paths.
    batch = 8
    input_size = 400
    hidden_size = 1000
    out_size = 3

    key = jax.random.PRNGKey(0)
    kx, kp = jax.random.split(key)
    x = jax.random.normal(kx, (batch, input_size), jnp.float32)
    w1, b1, w2, b2 = init_params(kp, input_size, hidden_size, out_size)

    # One-time setup (hoisted pad + bf16 cast); forward is jitted for reuse.
    params = jax.block_until_ready(prepare_params(w1, b1, w2, b2))
    fwd = jax.jit(simple_nn_forward, static_argnums=(2,))

    out = jax.block_until_ready(fwd(x, params, out_size))
    assert out.shape == (batch, out_size)

    # Reference with the same bf16-operand / f32-accumulation math.
    xb = x.astype(jnp.bfloat16)
    w1b = w1.astype(jnp.bfloat16)
    w2b = w2.astype(jnp.bfloat16)
    h_ref = jnp.maximum(
        jnp.dot(xb, w1b, preferred_element_type=jnp.float32) + b1, 0.0)
    ref_bf16 = jnp.dot(h_ref.astype(jnp.bfloat16), w2b,
                       preferred_element_type=jnp.float32) + b2
    assert jnp.allclose(out, ref_bf16, atol=1e-2, rtol=1e-2), \
        "mismatch vs bf16-matched reference"

    # Loose sanity check against the full-f32 reference (bf16 operand error).
    # TODO(synk): keep f32 MXU operands if exact PyTorch f32 parity is needed.
    ref_f32 = jnp.maximum(x @ w1 + b1, 0.0) @ w2 + b2
    assert jnp.allclose(out, ref_f32, atol=5e-2, rtol=5e-2), \
        "mismatch vs f32 reference"

    print("KERNEL_OK")
</pallas_src>

<mosaic_0001>
module attributes {stable_mosaic.version = 11 : i64} {
  func.func @mlp_kernel(%arg0: i32, %arg1: memref<8x400xf32, #tpu.memory_space<vmem>>, %arg2: memref<400x1024xbf16, #tpu.memory_space<vmem>>, %arg3: memref<1x1024xf32, #tpu.memory_space<vmem>>, %arg4: memref<1024x128xbf16, #tpu.memory_space<vmem>>, %arg5: memref<1x128xf32, #tpu.memory_space<vmem>>, %arg6: memref<8x128xf32, #tpu.memory_space<vmem>>) attributes {dimension_semantics = [#tpu.dimension_semantics<parallel>], iteration_bounds = array<i64: 1>, scalar_prefetch = 0 : i64, scratch_operands = 0 : i64, tpu.core_type = #tpu.core_type<tc>, window_params = [{transform_indices = @transform_0, window_bounds = array<i64: 8, 400>}, {pipeline_mode = #tpu.pipeline_mode<synchronous>, transform_indices = @transform_1, window_bounds = array<i64: 400, 1024>}, {pipeline_mode = #tpu.pipeline_mode<synchronous>, transform_indices = @transform_2, window_bounds = array<i64: 1, 1024>}, {pipeline_mode = #tpu.pipeline_mode<synchronous>, transform_indices = @transform_3, window_bounds = array<i64: 1024, 128>}, {pipeline_mode = #tpu.pipeline_mode<synchronous>, transform_indices = @transform_4, window_bounds = array<i64: 1, 128>}, {transform_indices = @transform_5, window_bounds = array<i64: 8, 128>}]} {
    %c0 = arith.constant 0 : index
    %c0_0 = arith.constant 0 : index
    %0 = vector.load %arg1[%c0, %c0_0] : memref<8x400xf32, #tpu.memory_space<vmem>>, vector<8x400xf32>
    %1 = arith.truncf %0 : vector<8x400xf32> to vector<8x400xbf16>
    %c0_1 = arith.constant 0 : index
    %c0_2 = arith.constant 0 : index
    %2 = vector.load %arg2[%c0_1, %c0_2] : memref<400x1024xbf16, #tpu.memory_space<vmem>>, vector<400x1024xbf16>
    %cst = arith.constant dense<0.000000e+00> : vector<8x1024xf32>
    %3 = tpu.matmul %1, %2, %cst {dimension_numbers = #tpu.dot_dimension_numbers<[1], [0], [0], [1], [0, 0, 1, 1], [], []>} : vector<8x400xbf16>, vector<400x1024xbf16>, vector<8x1024xf32> -> vector<8x1024xf32>
    %c0_3 = arith.constant 0 : index
    %c0_4 = arith.constant 0 : index
    %4 = vector.load %arg3[%c0_3, %c0_4] : memref<1x1024xf32, #tpu.memory_space<vmem>>, vector<1x1024xf32>
    %5 = vector.broadcast %4 : vector<1x1024xf32> to vector<8x1024xf32>
    %6 = arith.addf %3, %5 : vector<8x1024xf32>
    %cst_5 = arith.constant 0.000000e+00 : f32
    %7 = vector.broadcast %cst_5 : f32 to vector<8x1024xf32>
    %8 = arith.maximumf %6, %7 : vector<8x1024xf32>
    %9 = arith.truncf %8 : vector<8x1024xf32> to vector<8x1024xbf16>
    %c0_6 = arith.constant 0 : index
    %c0_7 = arith.constant 0 : index
    %10 = vector.load %arg4[%c0_6, %c0_7] : memref<1024x128xbf16, #tpu.memory_space<vmem>>, vector<1024x128xbf16>
    %cst_8 = arith.constant dense<0.000000e+00> : vector<8x128xf32>
    %11 = tpu.matmul %9, %10, %cst_8 {dimension_numbers = #tpu.dot_dimension_numbers<[1], [0], [0], [1], [0, 0, 1, 1], [], []>} : vector<8x1024xbf16>, vector<1024x128xbf16>, vector<8x128xf32> -> vector<8x128xf32>
    %c0_9 = arith.constant 0 : index
    %c0_10 = arith.constant 0 : index
    %12 = vector.load %arg5[%c0_9, %c0_10] : memref<1x128xf32, #tpu.memory_space<vmem>>, vector<1x128xf32>
    %13 = vector.broadcast %12 : vector<1x128xf32> to vector<8x128xf32>
    %14 = arith.addf %11, %13 : vector<8x128xf32>
    %c0_11 = arith.constant 0 : index
    %c0_12 = arith.constant 0 : index
    %15 = vector.load %arg6[%c0_11, %c0_12] : memref<8x128xf32, #tpu.memory_space<vmem>>, vector<8x128xf32>
    tpu.vector_store %arg6[%c0_11, %c0_12], %14 {strides = array<i32>} : memref<8x128xf32, #tpu.memory_space<vmem>>, vector<8x128xf32>,
    return
  }
  func.func @transform_0(%arg0: i32) -> (i32, i32) {
    %c0_i32 = arith.constant 0 : i32
    %c0_i32_0 = arith.constant 0 : i32
    return %arg0, %c0_i32 : i32, i32
  }
  func.func @transform_1(%arg0: i32) -> (i32, i32) {
    %c0_i32 = arith.constant 0 : i32
    %c0_i32_0 = arith.constant 0 : i32
    %c0_i32_1 = arith.constant 0 : i32
    return %c0_i32, %c0_i32_0 : i32, i32
  }
  func.func @transform_2(%arg0: i32) -> (i32, i32) {
    %c0_i32 = arith.constant 0 : i32
    %c0_i32_0 = arith.constant 0 : i32
    %c0_i32_1 = arith.constant 0 : i32
    return %c0_i32, %c0_i32_0 : i32, i32
  }
  func.func @transform_3(%arg0: i32) -> (i32, i32) {
    %c0_i32 = arith.constant 0 : i32
    %c0_i32_0 = arith.constant 0 : i32
    %c0_i32_1 = arith.constant 0 : i32
    return %c0_i32, %c0_i32_0 : i32, i32
  }
  func.func @transform_4(%arg0: i32) -> (i32, i32) {
    %c0_i32 = arith.constant 0 : i32
    %c0_i32_0 = arith.constant 0 : i32
    %c0_i32_1 = arith.constant 0 : i32
    return %c0_i32, %c0_i32_0 : i32, i32
  }
  func.func @transform_5(%arg0: i32) -> (i32, i32) {
    %c0_i32 = arith.constant 0 : i32
    %c0_i32_0 = arith.constant 0 : i32
    return %arg0, %c0_i32 : i32, i32
  }
}

</mosaic_0001>

<bundles_post_ra>
// kernel: simple_nn_forward.1
= control target key start
LH: loop header
LB: loop body
LE: loop exit
PB: predicated region body
PF: predicated region fallthrough
CT: control target
= control target key end

     0   :  { %10 = vsyncpa [#allocation3], 0  ;;  %s3044_s0 = inlined_call_operand.hbm [shape: f32[8,400], index: 0, kind: input, shape index: {}]   ;;  %s3045_s1 = inlined_call_operand.hbm [shape: bf16[400,1024], index: 1, kind: input, shape index: {}]   ;;  %s3046_s2 = inlined_call_operand.hbm [shape: f32[1,1024], index: 2, kind: input, shape index: {}]   ;;  %s3047_s3 = inlined_call_operand.hbm [shape: bf16[1024,128], index: 3, kind: input, shape index: {}]   ;;  %s3048_s4 = inlined_call_operand.vmem [shape: f32[1,128], index: 4, kind: input, shape index: {}]   ;;  %s3049_s5 = inlined_call_operand.vmem [shape: f32[8,128], index: 5, kind: output, shape index: {}]  }
   0x1   :  { %11 = vsyncpa [#allocation5], 0 }
   0x2   :  { %12 = vsyncpa [#allocation8], 0  ;;  %s2904_s18 = smov [#allocation4]   ;;  %s2810_s22 = scalar_lea.hbm %s3045_s1, 25600 }
   0x3   :  { %s28_s19 = sshll.u32 %s2904_s18, 4  ;;  %p2811_p0 = scmp.ne.s32.totalorder %s3045_s1, %s2810_s22  ;;  %s29_s19 = int_to_ptr.vmem [resolvable:$true] %s28_s19 }
   0x4   :  { %p2814_p1 = scmp.lt.u32.totalorder %s2810_s22, %s3045_s1 }
   0x6   :  { %p2816_p2 = pnand %p2814_p1, %p2811_p0 }
   0x8   :  { %2819 = shalt.err (!%p2816_p2)
}
   0x9   :  { %s2820_s27 = scalar_lea.vmem %s29_s19, 25600  ;;  %p2825_p4 = scmp.lt.s32.totalorder %s29_s19, %s29_s19 }
   0xa   :  { %p2821_p3 = scmp.ne.s32.totalorder %s29_s19, %s2820_s27  ;;  %p2826_p5 = scmp.lt.s32.totalorder %s2820_s27, %s2820_s27 }
   0xc   :  { %p2827_p6 = por %p2826_p5, %p2825_p4 }
   0xe   :  { %p2828_p7 = pnand %p2827_p6, %p2821_p3 }
  0x10   :  { %2831 = shalt.err (!%p2828_p7)
}
  0x11   :  { %s2905_s28 = smov 512   ;;  %s2906_s29 = smov 32  }
  0x12   :  { %34 = dma.hbm_to_vmem [thread:$0]  %s3045_s1, 25600, %s29_s19, [#allocation5], %s2905_s28, %s2905_s28, %s2906_s29  }
  0x13   :  { %s2907_s7 = smov [#allocation2]   ;;  %s2908_s9 = smov [#allocation6]  }
  0x14   :  { %s19_s8 = sshll.u32 %s2907_s7, 4  ;;  %s41_s10 = sshll.u32 %s2908_s9, 4  ;;  %s20_s8 = int_to_ptr.vmem [resolvable:$true] %s19_s8  ;;  %s42_s10 = int_to_ptr.vmem [resolvable:$true] %s41_s10 }
  0x15   :  { %s2832_s13 = scalar_lea.hbm %s3044_s0, 512 }
  0x16   :  { %p2833_p8 = scmp.ne.s32.totalorder %s3044_s0, %s2832_s13  ;;  %p2836_p9 = scmp.lt.u32.totalorder %s2832_s13, %s3044_s0 }
  0x18   :  { %p2838_p10 = pnand %p2836_p9, %p2833_p8 }
  0x1a   :  { %2841 = shalt.err (!%p2838_p10)
}
  0x1b   :  { %s2842_s1 = scalar_lea.vmem %s20_s8, 512  ;;  %p2847_p12 = scmp.lt.s32.totalorder %s20_s8, %s20_s8 }
  0x1c   :  { %p2843_p11 = scmp.ne.s32.totalorder %s20_s8, %s2842_s1  ;;  %p2848_p13 = scmp.lt.s32.totalorder %s2842_s1, %s2842_s1 }
  0x1e   :  { %p2849_p0 = por %p2848_p13, %p2847_p12 }
  0x20   :  { %p2850_p1 = pnand %p2849_p0, %p2843_p11 }
  0x22   :  { %2853 = shalt.err (!%p2850_p1)
}
  0x23   :  { %22 = dma.hbm_to_vmem [thread:$0]  %s3044_s0, 512, %s20_s8, [#allocation3]  }
  0x24   :  { %s2854_s22 = scalar_lea.hbm %s3046_s2, 128 }
  0x25   :  { %p2855_p2 = scmp.ne.s32.totalorder %s3046_s2, %s2854_s22  ;;  %p2858_p3 = scmp.lt.u32.totalorder %s2854_s22, %s3046_s2 }
  0x27   :  { %p2860_p4 = pnand %p2858_p3, %p2855_p2 }
  0x29   :  { %2863 = shalt.err (!%p2860_p4)
}
  0x2a   :  { %s2864_s27 = scalar_lea.vmem %s42_s10, 128  ;;  %p2869_p6 = scmp.lt.s32.totalorder %s42_s10, %s42_s10 }
  0x2b   :  { %p2865_p5 = scmp.ne.s32.totalorder %s42_s10, %s2864_s27  ;;  %p2870_p7 = scmp.lt.s32.totalorder %s2864_s27, %s2864_s27 }
  0x2d   :  { %p2871_p8 = por %p2870_p7, %p2869_p6 }
  0x2f   :  { %p2872_p9 = pnand %p2871_p8, %p2865_p5 }
  0x31   :  { %2875 = shalt.err (!%p2872_p9)
}
  0x32   :  { %44 = dma.hbm_to_vmem [thread:$0]  %s3046_s2, 128, %s42_s10, [#allocation5]  }
  0x33   :  { %s2909_s29 = smov [#allocation7]   ;;  %s2876_s8 = scalar_lea.hbm %s3047_s3, 8192 }
  0x34   :  { %s50_s30 = sshll.u32 %s2909_s29, 4  ;;  %p2877_p10 = scmp.ne.s32.totalorder %s3047_s3, %s2876_s8  ;;  %s51_s30 = int_to_ptr.vmem [resolvable:$true] %s50_s30 }
  0x35   :  { %p2880_p11 = scmp.lt.u32.totalorder %s2876_s8, %s3047_s3 }
  0x37   :  { %p2882_p12 = pnand %p2880_p11, %p2877_p10 }
  0x39   :  { %2885 = shalt.err (!%p2882_p12)
}
  0x3a   :  { %s2886_s14 = scalar_lea.vmem %s51_s30, 8192  ;;  %p2891_p0 = scmp.lt.s32.totalorder %s51_s30, %s51_s30 }
  0x3b   :  { %p2887_p13 = scmp.ne.s32.totalorder %s51_s30, %s2886_s14  ;;  %p2892_p1 = scmp.lt.s32.totalorder %s2886_s14, %s2886_s14 }
  0x3d   :  { %p2893_p2 = por %p2892_p1, %p2891_p0 }
  0x3f   :  { %p2894_p3 = pnand %p2893_p2, %p2887_p13 }
  0x41   :  { %2897 = shalt.err (!%p2894_p3)
}
  0x42   :  { %s2910_s2 = smov 64   ;;  %s2911_s10 = smov 4  }
  0x43   :  { %56 = dma.hbm_to_vmem [thread:$0]  %s3047_s3, 8192, %s51_s30, [#allocation8], %s2910_s2, %s2910_s2, %s2911_s10  }
  0x44   :  { %2898 = dma.done.wait [#allocation3], 512  }
  0x45   :  { %2899 = vsyncadd [#allocation3], 4294966784 }
  0x46   :  { %2900 = dma.done.wait [#allocation5], 25728  }
  0x47   :  { %2901 = vsyncadd [#allocation5], 4294941568 }
  0x48   :  { %2902 = dma.done.wait [#allocation8], 8192  }
  0x49   :  { %2903 = vsyncadd [#allocation8], 4294959104  ;;  %v80_v0 = vld [vmem:[#allocation4] sm:$0xff]  ;;  %v81_v2 = vld [vmem:[#allocation4 + $0x8] sm:$0xff]  ;;  %vm1322_vm0 = vcmask 130048  }
  0x4a   :  { %v84_v1 = vld [vmem:[#allocation4 + $0x20] sm:$0xff]  ;;  %v85_v4 = vld [vmem:[#allocation4 + $0x28] sm:$0xff] }
  0x4b   :  { %v2358_v3 = vcombine.high %v80_v0, %v84_v1  ;;  %v2357_v5 = vcombine.low %v80_v0, %v84_v1  ;;  %v88_v6 = vld [vmem:[#allocation4 + $0x40] sm:$0xff]  ;;  %v2360_v8 = vcombine.high %v81_v2, %v85_v4  ;;  %v2359_v9 = vcombine.low %v81_v2, %v85_v4  ;;  %v89_v11 = vld [vmem:[#allocation4 + $0x48] sm:$0xff] }
  0x4c   :  { %v92_v7 = vld [vmem:[#allocation4 + $0x60] sm:$0xff]  ;;  %v93_v12 = vld [vmem:[#allocation4 + $0x68] sm:$0xff] }
  0x4d   :  { %v2366_v10 = vcombine.high %v88_v6, %v92_v7  ;;  %v96_v13 = vld [vmem:[#allocation4 + $0x80] sm:$0xff]  ;;  %1326 = vmatprep.subr.bf16.mxu0 %v2358_v3  ;;  %v2368_v14 = vcombine.high %v89_v11, %v93_v12  ;;  %v97_v16 = vld [vmem:[#allocation4 + $0x88] sm:$0xff]  ;;  %1408 = vmatprep.subr.bf16.mxu1 %v2360_v8  ;;  %v2365_v18 = vcombine.low %v88_v6, %v92_v7 }
  0x4e   :  { %v100_v15 = vld [vmem:[#allocation4 + $0xa0] sm:$0xff]  ;;  %v101_v17 = vld [vmem:[#allocation4 + $0xa8] sm:$0xff]  ;;  %1327 = vmatpush1.bf16.msra.mxu0 %v2357_v5  ;;  %1409 = vmatpush1.bf16.msra.mxu1 %v2359_v9  ;;  %v2367_v19 = vcombine.low %v89_v11, %v93_v12 }
  0x4f   :  { %1328 = vmatprep.subr.bf16.mxu0 %v2366_v10  ;;  %v2374_v20 = vcombine.high %v96_v13, %v100_v15  ;;  %1410 = vmatprep.subr.bf16.mxu1 %v2368_v14  ;;  %v2376_v21 = vcombine.high %v97_v16, %v101_v17  ;;  %v104_v22 = vld [vmem:[#allocation4 + $0xc0] sm:$0xff]  ;;  %v105_v24 = vld [vmem:[#allocation4 + $0xc8] sm:$0xff]  ;;  %v2373_v26 = vcombine.low %v96_v13, %v100_v15 }
  0x50   :  { %v108_v23 = vld [vmem:[#allocation4 + $0xe0] sm:$0xff]  ;;  %v109_v25 = vld [vmem:[#allocation4 + $0xe8] sm:$0xff]  ;;  %v2375_v27 = vcombine.low %v97_v16, %v101_v17 }
  0x51   :  { %v2382_v28 = vcombine.high %v104_v22, %v108_v23  ;;  %v2384_v29 = vcombine.high %v105_v24, %v109_v25  ;;  %v112_v30 = vld [vmem:[#allocation4 + $0x100] sm:$0xff]  ;;  %v113_v32 = vld [vmem:[#allocation4 + $0x108] sm:$0xff]  ;;  %v2381_v34 = vcombine.low %v104_v22, %v108_v23  ;;  %v2383_v35 = vcombine.low %v105_v24, %v109_v25 }
  0x52   :  { %1329 = vmatpush1.bf16.msra.mxu0 %v2365_v18  ;;  %1411 = vmatpush1.bf16.msra.mxu1 %v2367_v19  ;;  %v116_v31 = vld [vmem:[#allocation4 + $0x120] sm:$0xff]  ;;  %v117_v33 = vld [vmem:[#allocation4 + $0x128] sm:$0xff] }
  0x53   :  { %1330 = vmatprep.subr.bf16.mxu0 %v2374_v20  ;;  %1412 = vmatprep.subr.bf16.mxu1 %v2376_v21  ;;  %v2390_v36 = vcombine.high %v112_v30, %v116_v31  ;;  %v2392_v37 = vcombine.high %v113_v32, %v117_v33  ;;  %v120_v38 = vld [vmem:[#allocation4 + $0x140] sm:$0xff]  ;;  %v121_v40 = vld [vmem:[#allocation4 + $0x148] sm:$0xff]  ;;  %v2389_v42 = vcombine.low %v112_v30, %v116_v31 }
  0x54   :  { %v124_v39 = vld [vmem:[#allocation4 + $0x160] sm:$0xff]  ;;  %v125_v41 = vld [vmem:[#allocation4 + $0x168] sm:$0xff]  ;;  %v2391_v43 = vcombine.low %v113_v32, %v117_v33 }
  0x55   :  { %v2398_v44 = vcombine.high %v120_v38, %v124_v39  ;;  %v2400_v45 = vcombine.high %v121_v40, %v125_v41  ;;  %v128_v46 = vld [vmem:[#allocation4 + $0x180] sm:$0xff]  ;;  %v129_v48 = vld [vmem:[#allocation4 + $0x188] sm:$0xff]  ;;  %v2397_v50 = vcombine.low %v120_v38, %v124_v39  ;;  %v2399_v51 = vcombine.low %v121_v40, %v125_v41 }
  0x56   :  { %1331 = vmatpush1.bf16.msra.mxu0 %v2373_v26  ;;  %1413 = vmatpush1.bf16.msra.mxu1 %v2375_v27  ;;  %v132_v47 = vld [vmem:[#allocation4 + $0x1a0] sm:$0xff]  ;;  %v133_v49 = vld [vmem:[#allocation4 + $0x1a8] sm:$0xff] }
  0x57   :  { %1332 = vmatprep.subr.bf16.mxu0 %v2382_v28  ;;  %1414 = vmatprep.subr.bf16.mxu1 %v2384_v29  ;;  %v2406_v52 = vcombine.high %v128_v46, %v132_v47  ;;  %v73_v53 = vld [vmem:[#allocation2 + $0x8] sm:$0xff]  ;;  %v2408_v54 = vcombine.high %v129_v48, %v133_v49  ;;  %v136_v55 = vld [vmem:[#allocation4 + $0x1c0] sm:$0xff]  ;;  %v2405_v60 = vcombine.low %v128_v46, %v132_v47 }
  0x58   :  { %v140_v56 = vld [vmem:[#allocation4 + $0x1e0] sm:$0xff]  ;;  %v2990_v57 = vpack.c.bf16 %v73_v53, %v73_v53  ;;  %v137_v58 = vld [vmem:[#allocation4 + $0x1c8] sm:$0xff]  ;;  %v2407_v61 = vcombine.low %v129_v48, %v133_v49 }
  0x59   :  { %v141_v59 = vld [vmem:[#allocation4 + $0x1e8] sm:$0xff]  ;;  %v2414_v62 = vcombine.high %v136_v55, %v140_v56  ;;  %v144_v0 = vld [vmem:[#allocation4 + $0x200] sm:$0xff]  ;;  %v2413_v4 = vcombine.low %v136_v55, %v140_v56 }
  0x5a   :  { %1333 = vmatpush1.bf16.msra.mxu0 %v2381_v34  ;;  %1415 = vmatpush1.bf16.msra.mxu1 %v2383_v35  ;;  %v2416_v63 = vcombine.high %v137_v58, %v141_v59  ;;  %v148_v1 = vld [vmem:[#allocation4 + $0x220] sm:$0xff]  ;;  %v145_v2 = vld [vmem:[#allocation4 + $0x208] sm:$0xff]  ;;  %v2415_v5 = vcombine.low %v137_v58, %v141_v59 }
  0x5b   :  { %1334 = vmatprep.subr.bf16.mxu0 %v2390_v36  ;;  %1416 = vmatprep.subr.bf16.mxu1 %v2392_v37  ;;  %v149_v3 = vld [vmem:[#allocation4 + $0x228] sm:$0xff]  ;;  %v2422_v6 = vcombine.high %v144_v0, %v148_v1  ;;  %v152_v8 = vld [vmem:[#allocation4 + $0x240] sm:$0xff]  ;;  %v2421_v12 = vcombine.low %v144_v0, %v148_v1 }
  0x5c   :  { %1358 = vmatprep.mubr.bf16.mxu0 %v2990_v57  ;;  %1440 = vmatprep.mubr.bf16.mxu1 %v2990_v57  ;;  %v2424_v7 = vcombine.high %v145_v2, %v149_v3  ;;  %v156_v9 = vld [vmem:[#allocation4 + $0x260] sm:$0xff]  ;;  %v153_v10 = vld [vmem:[#allocation4 + $0x248] sm:$0xff]  ;;  %v2423_v13 = vcombine.low %v145_v2, %v149_v3 }
  0x5d   :  { %v157_v11 = vld [vmem:[#allocation4 + $0x268] sm:$0xff]  ;;  %v2430_v14 = vcombine.high %v152_v8, %v156_v9  ;;  %v160_v16 = vld [vmem:[#allocation4 + $0x280] sm:$0xff]  ;;  %v2429_v20 = vcombine.low %v152_v8, %v156_v9 }
  0x5e   :  { %1335 = vmatpush1.bf16.msra.mxu0 %v2389_v42  ;;  %1417 = vmatpush1.bf16.msra.mxu1 %v2391_v43  ;;  %v2432_v15 = vcombine.high %v153_v10, %v157_v11  ;;  %v164_v17 = vld [vmem:[#allocation4 + $0x2a0] sm:$0xff]  ;;  %v161_v18 = vld [vmem:[#allocation4 + $0x288] sm:$0xff]  ;;  %v2431_v21 = vcombine.low %v153_v10, %v157_v11 }
  0x5f   :  { %1336 = vmatprep.subr.bf16.mxu0 %v2398_v44  ;;  %1418 = vmatprep.subr.bf16.mxu1 %v2400_v45  ;;  %v165_v19 = vld [vmem:[#allocation4 + $0x2a8] sm:$0xff]  ;;  %v2438_v22 = vcombine.high %v160_v16, %v164_v17  ;;  %v168_v24 = vld [vmem:[#allocation4 + $0x2c0] sm:$0xff]  ;;  %v2437_v28 = vcombine.low %v160_v16, %v164_v17 }
  0x60   :  { %v2440_v23 = vcombine.high %v161_v18, %v165_v19  ;;  %v172_v25 = vld [vmem:[#allocation4 + $0x2e0] sm:$0xff]  ;;  %v169_v26 = vld [vmem:[#allocation4 + $0x2c8] sm:$0xff]  ;;  %v2439_v29 = vcombine.low %v161_v18, %v165_v19 }
  0x61   :  { %v173_v27 = vld [vmem:[#allocation4 + $0x2e8] sm:$0xff]  ;;  %v2446_v30 = vcombine.high %v168_v24, %v172_v25  ;;  %v176_v32 = vld [vmem:[#allocation4 + $0x300] sm:$0xff]  ;;  %v2445_v36 = vcombine.low %v168_v24, %v172_v25 }
  0x62   :  { %1337 = vmatpush1.bf16.msra.mxu0 %v2397_v50  ;;  %1419 = vmatpush1.bf16.msra.mxu1 %v2399_v51  ;;  %v2448_v31 = vcombine.high %v169_v26, %v173_v27  ;;  %v180_v33 = vld [vmem:[#allocation4 + $0x320] sm:$0xff]  ;;  %v177_v34 = vld [vmem:[#allocation4 + $0x308] sm:$0xff]  ;;  %v2447_v37 = vcombine.low %v169_v26, %v173_v27 }
  0x63   :  { %1338 = vmatprep.subr.bf16.mxu0 %v2406_v52  ;;  %1420 = vmatprep.subr.bf16.mxu1 %v2408_v54  ;;  %v181_v35 = vld [vmem:[#allocation4 + $0x328] sm:$0xff]  ;;  %v2454_v38 = vcombine.high %v176_v32, %v180_v33  ;;  %v184_v40 = vld [vmem:[#allocation4 + $0x340] sm:$0xff]  ;;  %v2453_v44 = vcombine.low %v176_v32, %v180_v33 }
  0x64   :  { %v2456_v39 = vcombine.high %v177_v34, %v181_v35  ;;  %v188_v41 = vld [vmem:[#allocation4 + $0x360] sm:$0xff]  ;;  %v185_v42 = vld [vmem:[#allocation4 + $0x348] sm:$0xff]  ;;  %v2455_v45 = vcombine.low %v177_v34, %v181_v35 }
  0x65   :  { %v189_v43 = vld [vmem:[#allocation4 + $0x368] sm:$0xff]  ;;  %v2462_v46 = vcombine.high %v184_v40, %v188_v41  ;;  %v192_v48 = vld [vmem:[#allocation4 + $0x380] sm:$0xff]  ;;  %v2461_v52 = vcombine.low %v184_v40, %v188_v41 }
  0x66   :  { %1339 = vmatpush1.bf16.msra.mxu0 %v2405_v60  ;;  %1421 = vmatpush1.bf16.msra.mxu1 %v2407_v61  ;;  %v2464_v47 = vcombine.high %v185_v42, %v189_v43  ;;  %v196_v49 = vld [vmem:[#allocation4 + $0x3a0] sm:$0xff]  ;;  %v193_v50 = vld [vmem:[#allocation4 + $0x388] sm:$0xff]  ;;  %v2463_v53 = vcombine.low %v185_v42, %v189_v43 }
  0x67   :  { %1340 = vmatprep.subr.bf16.mxu0 %v2414_v62  ;;  %1422 = vmatprep.subr.bf16.mxu1 %v2416_v63  ;;  %v197_v51 = vld [vmem:[#allocation4 + $0x3a8] sm:$0xff]  ;;  %v2470_v54 = vcombine.high %v192_v48, %v196_v49  ;;  %v200_v56 = vld [vmem:[#allocation4 + $0x3c0] sm:$0xff]  ;;  %v2469_v61 = vcombine.low %v192_v48, %v196_v49 }
  0x68   :  { %v2472_v55 = vcombine.high %v193_v50, %v197_v51  ;;  %v204_v58 = vld [vmem:[#allocation4 + $0x3e0] sm:$0xff]  ;;  %v201_v59 = vld [vmem:[#allocation4 + $0x3c8] sm:$0xff]  ;;  %v2471_v62 = vcombine.low %v193_v50, %v197_v51 }
  0x69   :  { %v205_v60 = vld [vmem:[#allocation4 + $0x3e8] sm:$0xff]  ;;  %v2478_v63 = vcombine.high %v200_v56, %v204_v58  ;;  %v208_v1 = vld [vmem:[#allocation4 + $0x400] sm:$0xff] }
  0x6a   :  { %1341 = vmatpush1.bf16.msra.mxu0 %v2413_v4  ;;  %1423 = vmatpush1.bf16.msra.mxu1 %v2415_v5  ;;  %v2480_v0 = vcombine.high %v201_v59, %v205_v60  ;;  %v212_v2 = vld [vmem:[#allocation4 + $0x420] sm:$0xff]  ;;  %v209_v3 = vld [vmem:[#allocation4 + $0x408] sm:$0xff]  ;;  %v2477_v5 = vcombine.low %v200_v56, %v204_v58 }
  0x6b   :  { %1342 = vmatprep.subr.bf16.mxu0 %v2422_v6  ;;  %1424 = vmatprep.subr.bf16.mxu1 %v2424_v7  ;;  %v213_v4 = vld [vmem:[#allocation4 + $0x428] sm:$0xff]  ;;  %v72_v6 = vld [vmem:[#allocation2] sm:$0xff]  ;;  %v2479_v7 = vcombine.low %v201_v59, %v205_v60  ;;  %v2486_v8 = vcombine.high %v208_v1, %v212_v2  ;;  %v2485_v16 = vcombine.low %v208_v1, %v212_v2 }
  0x6c   :  { %v2488_v9 = vcombine.high %v209_v3, %v213_v4  ;;  %v216_v10 = vld [vmem:[#allocation4 + $0x440] sm:$0xff]  ;;  %v2487_v17 = vcombine.low %v209_v3, %v213_v4  ;;  %v237_v32 = vld [vmem:[#allocation4 + $0x4e8] sm:$0xff] }
  0x6d   :  { %v220_v11 = vld [vmem:[#allocation4 + $0x460] sm:$0xff]  ;;  %v253_v48 = vld [vmem:[#allocation4 + $0x568] sm:$0xff] }
  0x6e   :  { %1343 = vmatpush1.bf16.msra.mxu0 %v2421_v12  ;;  %1425 = vmatpush1.bf16.msra.mxu1 %v2423_v13  ;;  %v2994_v12 = vpack.c.bf16 %v72_v6, %v72_v6  ;;  %v217_v13 = vld [vmem:[#allocation4 + $0x448] sm:$0xff]  ;;  %v2494_v18 = vcombine.high %v216_v10, %v220_v11  ;;  %v224_v19 = vld [vmem:[#allocation4 + $0x480] sm:$0xff]  ;;  %v2493_v25 = vcombine.low %v216_v10, %v220_v11  ;;  %v82_v11 = vld [vmem:[#allocation4 + $0x10] sm:$0xff] }
  0x6f   :  { %1344 = vmatprep.subr.bf16.mxu0 %v2430_v14  ;;  %1426 = vmatprep.subr.bf16.mxu1 %v2432_v15  ;;  %v221_v14 = vld [vmem:[#allocation4 + $0x468] sm:$0xff]  ;;  %v75_v15 = vld [vmem:[#allocation2 + $0x18] sm:$0xff]  ;;  %v240_v34 = vld [vmem:[#allocation4 + $0x500] sm:$0xff] }
  0x70   :  { %v2996_v24 = vpack.c.bf16 %v75_v15, %v75_v15  ;;  %v2495_v26 = vcombine.low %v217_v13, %v221_v14  ;;  %v244_v35 = vld [vmem:[#allocation4 + $0x520] sm:$0xff]  ;;  %v261_v56 = vld [vmem:[#allocation4 + $0x5a8] sm:$0xff]  ;;  %v86_v15 = vld [vmem:[#allocation4 + $0x30] sm:$0xff] }
  0x71   :  { %v2518_v43 = vcombine.high %v240_v34, %v244_v35  ;;  %v2517_v49 = vcombine.low %v240_v34, %v244_v35  ;;  %v256_v50 = vld [vmem:[#allocation4 + $0x580] sm:$0xff]  ;;  %v269_v1 = vld [vmem:[#allocation4 + $0x5e8] sm:$0xff]  ;;  %v99_v35 = vld [vmem:[#allocation4 + $0x98] sm:$0xff] }
  0x72   :  { %1345 = vmatpush1.bf16.msra.mxu0 %v2429_v20  ;;  %1427 = vmatpush1.bf16.msra.mxu1 %v2431_v21  ;;  %v228_v20 = vld [vmem:[#allocation4 + $0x4a0] sm:$0xff]  ;;  %v2496_v21 = vcombine.high %v217_v13, %v221_v14 }
  0x73   :  { %1346 = vmatprep.subr.bf16.mxu0 %v2438_v22  ;;  %1428 = vmatprep.subr.bf16.mxu1 %v2440_v23  ;;  %v225_v22 = vld [vmem:[#allocation4 + $0x488] sm:$0xff]  ;;  %v2502_v27 = vcombine.high %v224_v19, %v228_v20  ;;  %v2501_v33 = vcombine.low %v224_v19, %v228_v20  ;;  %v264_v59 = vld [vmem:[#allocation4 + $0x5c0] sm:$0xff]  ;;  %v87_v19 = vld [vmem:[#allocation4 + $0x38] sm:$0xff] }
  0x74   :  { %v229_v23 = vld [vmem:[#allocation4 + $0x4a8] sm:$0xff]  ;;  %v272_v3 = vld [vmem:[#allocation4 + $0x600] sm:$0xff] }
  0x75   :  { %v276_v6 = vld [vmem:[#allocation4 + $0x620] sm:$0xff] }
  0x76   :  { %1347 = vmatpush1.bf16.msra.mxu0 %v2437_v28  ;;  %1429 = vmatpush1.bf16.msra.mxu1 %v2439_v29  ;;  %v232_v28 = vld [vmem:[#allocation4 + $0x4c0] sm:$0xff]  ;;  %v2550_v14 = vcombine.high %v272_v3, %v276_v6  ;;  %v2549_v20 = vcombine.low %v272_v3, %v276_v6  ;;  %v131_v3 = vld [vmem:[#allocation4 + $0x198] sm:$0xff] }
  0x77   :  { %1348 = vmatprep.subr.bf16.mxu0 %v2446_v30  ;;  %1430 = vmatprep.subr.bf16.mxu1 %v2448_v31  ;;  %v236_v29 = vld [vmem:[#allocation4 + $0x4e0] sm:$0xff]  ;;  %v233_v30 = vld [vmem:[#allocation4 + $0x4c8] sm:$0xff]  ;;  %v2504_v31 = vcombine.high %v225_v22, %v229_v23 }
  0x78   :  { %v2512_v40 = vcombine.high %v233_v30, %v237_v32  ;;  %v2509_v41 = vcombine.low %v232_v28, %v236_v29  ;;  %v2511_v42 = vcombine.low %v233_v30, %v237_v32  ;;  %v2361_v30 = vcombine.low %v82_v11, %v86_v15  ;;  %v102_v32 = vld [vmem:[#allocation4 + $0xb0] sm:$0xff] }
  0x7a   :  { %1349 = vmatpush1.bf16.msra.mxu0 %v2445_v36  ;;  %1431 = vmatpush1.bf16.msra.mxu1 %v2447_v37  ;;  %v2503_v36 = vcombine.low %v225_v22, %v229_v23  ;;  %v2510_v37 = vcombine.high %v232_v28, %v236_v29  ;;  %v94_v22 = vld [vmem:[#allocation4 + $0x70] sm:$0xff]  ;;  %v95_v29 = vld [vmem:[#allocation4 + $0x78] sm:$0xff] }
  0x7b   :  { %1350 = vmatprep.subr.bf16.mxu0 %v2454_v38  ;;  %1432 = vmatprep.subr.bf16.mxu1 %v2456_v39  ;;  %v241_v38 = vld [vmem:[#allocation4 + $0x508] sm:$0xff] }
  0x7c   :  { %v245_v39 = vld [vmem:[#allocation4 + $0x528] sm:$0xff] }
  0x7d   :  { %v2519_v51 = vcombine.low %v241_v38, %v245_v39 }
  0x7e   :  { %1351 = vmatpush1.bf16.msra.mxu0 %v2453_v44  ;;  %1433 = vmatpush1.bf16.msra.mxu1 %v2455_v45  ;;  %v248_v44 = vld [vmem:[#allocation4 + $0x540] sm:$0xff] }
  0x7f   :  { %1352 = vmatprep.subr.bf16.mxu0 %v2462_v46  ;;  %1434 = vmatprep.subr.bf16.mxu1 %v2464_v47  ;;  %v252_v45 = vld [vmem:[#allocation4 + $0x560] sm:$0xff]  ;;  %v249_v46 = vld [vmem:[#allocation4 + $0x548] sm:$0xff]  ;;  %v2520_v47 = vcombine.high %v241_v38, %v245_v39  ;;  %v106_v39 = vld [vmem:[#allocation4 + $0xd0] sm:$0xff] }
  0x80   :  { %v2525_v58 = vcombine.low %v248_v44, %v252_v45  ;;  %v2527_v60 = vcombine.low %v249_v46, %v253_v48 }
  0x82   :  { %1353 = vmatpush1.bf16.msra.mxu0 %v2461_v52  ;;  %1435 = vmatpush1.bf16.msra.mxu1 %v2463_v53  ;;  %v2526_v52 = vcombine.high %v248_v44, %v252_v45  ;;  %v260_v53 = vld [vmem:[#allocation4 + $0x5a0] sm:$0xff]  ;;  %v111_v44 = vld [vmem:[#allocation4 + $0xf8] sm:$0xff] }
  0x83   :  { %1354 = vmatprep.subr.bf16.mxu0 %v2470_v54  ;;  %1436 = vmatprep.subr.bf16.mxu1 %v2472_v55  ;;  %v257_v54 = vld [vmem:[#allocation4 + $0x588] sm:$0xff]  ;;  %v2528_v55 = vcombine.high %v249_v46, %v253_v48  ;;  %v2533_v2 = vcombine.low %v256_v50, %v260_v53  ;;  %v118_v48 = vld [vmem:[#allocation4 + $0x130] sm:$0xff] }
  0x84   :  { %v2535_v4 = vcombine.low %v257_v54, %v261_v56 }
  0x86   :  { %1355 = vmatpush1.bf16.msra.mxu0 %v2469_v61  ;;  %1437 = vmatpush1.bf16.msra.mxu1 %v2471_v62  ;;  %v2534_v61 = vcombine.high %v256_v50, %v260_v53  ;;  %v268_v62 = vld [vmem:[#allocation4 + $0x5e0] sm:$0xff] }
  0x87   :  { %1356 = vmatprep.subr.bf16.mxu0 %v2478_v63  ;;  %1438 = vmatprep.subr.bf16.mxu1 %v2480_v0  ;;  %v265_v63 = vld [vmem:[#allocation4 + $0x5c8] sm:$0xff]  ;;  %v2536_v0 = vcombine.high %v257_v54, %v261_v56  ;;  %v2541_v10 = vcombine.low %v264_v59, %v268_v62  ;;  %v126_v56 = vld [vmem:[#allocation4 + $0x170] sm:$0xff] }
  0x88   :  { %v2543_v13 = vcombine.low %v265_v63, %v269_v1 }
  0x8a   :  { %1357 = vmatpush1.bf16.msra.mxu0 %v2477_v5  ;;  %1439 = vmatpush1.bf16.msra.mxu1 %v2479_v7  ;;  %v2542_v5 = vcombine.high %v264_v59, %v268_v62  ;;  %v273_v7 = vld [vmem:[#allocation4 + $0x608] sm:$0xff]  ;;  %v123_v59 = vld [vmem:[#allocation4 + $0x158] sm:$0xff] }
  0x8b   :  { %1367 = vmatprep.subr.bf16.mxu0 %v2486_v8  ;;  %1449 = vmatprep.subr.bf16.mxu1 %v2488_v9  ;;  %v2544_v8 = vcombine.high %v265_v63, %v269_v1  ;;  %v277_v9 = vld [vmem:[#allocation4 + $0x628] sm:$0xff]  ;;  %v130_v63 = vld [vmem:[#allocation4 + $0x190] sm:$0xff] }
  0x8c   :  { %v2551_v23 = vcombine.low %v273_v7, %v277_v9 }
  0x8d   :  { %1359 = vmatmul.mubr.bf16.vlgmr.msra.gmra.mrb[0].mxu0 %v2994_v12  ;;  %1441 = vmatmul.mubr.bf16.vlgmr.msra.gmra.mrb[0].mxu1 %v2994_v12 }
  0x8e   :  { %1368 = vmatpush1.bf16.msra.mxu0 %v2485_v16  ;;  %1450 = vmatpush1.bf16.msra.mxu1 %v2487_v17  ;;  %v83_v16 = vld [vmem:[#allocation4 + $0x18] sm:$0xff]  ;;  %v2552_v17 = vcombine.high %v273_v7, %v277_v9 }
  0x8f   :  { %1369 = vmatprep.subr.bf16.mxu0 %v2494_v18  ;;  %1451 = vmatprep.subr.bf16.mxu1 %v2496_v21  ;;  %v74_v18 = vld [vmem:[#allocation2 + $0x10] sm:$0xff] }
  0x90   :  { %2557 = vmatprep.mubr.msk.bf16.mxu0 %vm1322_vm0, %v2996_v24  ;;  %2558 = vmatprep.mubr.msk.bf16.mxu1 %vm1322_vm0, %v2996_v24  ;;  %v90_v21 = vld [vmem:[#allocation4 + $0x50] sm:$0xff]  ;;  %v3004_v28 = vpack.c.bf16 %v74_v18, %v74_v18 }
  0x91   :  { %v2370_v34 = vcombine.high %v90_v21, %v94_v22  ;;  %v2369_v38 = vcombine.low %v90_v21, %v94_v22  ;;  %v147_v21 = vld [vmem:[#allocation4 + $0x218] sm:$0xff] }
  0x92   :  { %1370 = vmatpush1.bf16.msra.mxu0 %v2493_v25  ;;  %1452 = vmatpush1.bf16.msra.mxu1 %v2495_v26  ;;  %v2362_v25 = vcombine.high %v82_v11, %v86_v15  ;;  %v91_v26 = vld [vmem:[#allocation4 + $0x58] sm:$0xff]  ;;  %v142_v11 = vld [vmem:[#allocation4 + $0x1f0] sm:$0xff] }
  0x93   :  { %1371 = vmatprep.subr.bf16.mxu0 %v2502_v27  ;;  %1453 = vmatprep.subr.bf16.mxu1 %v2504_v31  ;;  %v2364_v27 = vcombine.high %v83_v16, %v87_v19  ;;  %v98_v31 = vld [vmem:[#allocation4 + $0x90] sm:$0xff]  ;;  %v151_v22 = vld [vmem:[#allocation4 + $0x238] sm:$0xff] }
  0x94   :  { %v2377_v46 = vcombine.low %v98_v31, %v102_v32 }
  0x96   :  { %1372 = vmatpush1.bf16.msra.mxu0 %v2501_v33  ;;  %1454 = vmatpush1.bf16.msra.mxu1 %v2503_v36  ;;  %v2363_v33 = vcombine.low %v83_v16, %v87_v19  ;;  %v103_v36 = vld [vmem:[#allocation4 + $0xb8] sm:$0xff]  ;;  %v146_v19 = vld [vmem:[#allocation4 + $0x210] sm:$0xff] }
  0x97   :  { %1373 = vmatprep.subr.bf16.mxu0 %v2510_v37  ;;  %1455 = vmatprep.subr.bf16.mxu1 %v2512_v40  ;;  %v2372_v37 = vcombine.high %v91_v26, %v95_v29  ;;  %v110_v40 = vld [vmem:[#allocation4 + $0xf0] sm:$0xff]  ;;  %v2380_v45 = vcombine.high %v99_v35, %v103_v36 }
  0x98   :  { %v2386_v50 = vcombine.high %v106_v39, %v110_v40  ;;  %v2385_v54 = vcombine.low %v106_v39, %v110_v40  ;;  %v163_v39 = vld [vmem:[#allocation4 + $0x298] sm:$0xff] }
  0x99   :  { %v167_v40 = vld [vmem:[#allocation4 + $0x2b8] sm:$0xff] }
  0x9a   :  { %1374 = vmatpush1.bf16.msra.mxu0 %v2509_v41  ;;  %1456 = vmatpush1.bf16.msra.mxu1 %v2511_v42  ;;  %v2371_v41 = vcombine.low %v91_v26, %v95_v29  ;;  %v2378_v42 = vcombine.high %v98_v31, %v102_v32  ;;  %v154_v29 = vld [vmem:[#allocation4 + $0x250] sm:$0xff]  ;;  %v155_v31 = vld [vmem:[#allocation4 + $0x258] sm:$0xff] }
  0x9b   :  { %1375 = vmatprep.subr.bf16.mxu0 %v2518_v43  ;;  %1457 = vmatprep.subr.bf16.mxu1 %v2520_v47  ;;  %v107_v43 = vld [vmem:[#allocation4 + $0xd8] sm:$0xff]  ;;  %v114_v47 = vld [vmem:[#allocation4 + $0x110] sm:$0xff] }
  0x9c   :  { %v2388_v53 = vcombine.high %v107_v43, %v111_v44  ;;  %v2393_v62 = vcombine.low %v114_v47, %v118_v48  ;;  %v159_v32 = vld [vmem:[#allocation4 + $0x278] sm:$0xff] }
  0x9e   :  { %1376 = vmatpush1.bf16.msra.mxu0 %v2517_v49  ;;  %1458 = vmatpush1.bf16.msra.mxu1 %v2519_v51  ;;  %v2379_v49 = vcombine.low %v99_v35, %v103_v36  ;;  %v115_v51 = vld [vmem:[#allocation4 + $0x118] sm:$0xff]  ;;  %v2436_v36 = vcombine.high %v155_v31, %v159_v32 }
  0x9f   :  { %1377 = vmatprep.subr.bf16.mxu0 %v2526_v52  ;;  %1459 = vmatprep.subr.bf16.mxu1 %v2528_v55  ;;  %v119_v52 = vld [vmem:[#allocation4 + $0x138] sm:$0xff]  ;;  %v122_v55 = vld [vmem:[#allocation4 + $0x150] sm:$0xff] }
  0xa0   :  { %v2395_v1 = vcombine.low %v115_v51, %v119_v52  ;;  %v2401_v6 = vcombine.low %v122_v55, %v126_v56 }
  0xa2   :  { %1378 = vmatpush1.bf16.msra.mxu0 %v2525_v58  ;;  %1460 = vmatpush1.bf16.msra.mxu1 %v2527_v60  ;;  %v2387_v58 = vcombine.low %v107_v43, %v111_v44  ;;  %v127_v60 = vld [vmem:[#allocation4 + $0x178] sm:$0xff]  ;;  %v2444_v44 = vcombine.high %v163_v39, %v167_v40 }
  0xa3   :  { %1379 = vmatprep.subr.bf16.mxu0 %v2534_v61  ;;  %1461 = vmatprep.subr.bf16.mxu1 %v2536_v0  ;;  %v2396_v61 = vcombine.high %v115_v51, %v119_v52  ;;  %v134_v0 = vld [vmem:[#allocation4 + $0x1b0] sm:$0xff]  ;;  %v2403_v7 = vcombine.low %v123_v59, %v127_v60 }
  0xa4   :  { %v2409_v15 = vcombine.low %v130_v63, %v134_v0 }
  0xa6   :  { %1380 = vmatpush1.bf16.msra.mxu0 %v2533_v2  ;;  %1462 = vmatpush1.bf16.msra.mxu1 %v2535_v4  ;;  %v2402_v2 = vcombine.high %v122_v55, %v126_v56  ;;  %v2404_v4 = vcombine.high %v123_v59, %v127_v60  ;;  %v179_v55 = vld [vmem:[#allocation4 + $0x318] sm:$0xff] }
  0xa7   :  { %1381 = vmatprep.subr.bf16.mxu0 %v2542_v5  ;;  %1463 = vmatprep.subr.bf16.mxu1 %v2544_v8  ;;  %v135_v5 = vld [vmem:[#allocation4 + $0x1b8] sm:$0xff]  ;;  %v2410_v8 = vcombine.high %v130_v63, %v134_v0 }
  0xa8   :  { %v2412_v9 = vcombine.high %v131_v3, %v135_v5  ;;  %v2411_v16 = vcombine.low %v131_v3, %v135_v5  ;;  %v183_v56 = vld [vmem:[#allocation4 + $0x338] sm:$0xff]  ;;  %v194_v5 = vld [vmem:[#allocation4 + $0x390] sm:$0xff] }
  0xa9   :  { %v2460_v60 = vcombine.high %v179_v55, %v183_v56  ;;  %v187_v63 = vld [vmem:[#allocation4 + $0x358] sm:$0xff] }
  0xaa   :  { %1382 = vmatpush1.bf16.msra.mxu0 %v2541_v10  ;;  %1464 = vmatpush1.bf16.msra.mxu1 %v2543_v13  ;;  %v138_v10 = vld [vmem:[#allocation4 + $0x1d0] sm:$0xff]  ;;  %v139_v13 = vld [vmem:[#allocation4 + $0x1d8] sm:$0xff] }
  0xab   :  { %1383 = vmatprep.subr.bf16.mxu0 %v2550_v14  ;;  %1465 = vmatprep.subr.bf16.mxu1 %v2552_v17  ;;  %v143_v14 = vld [vmem:[#allocation4 + $0x1f8] sm:$0xff]  ;;  %v2418_v17 = vcombine.high %v138_v10, %v142_v11 }
  0xac   :  { %v2420_v18 = vcombine.high %v139_v13, %v143_v14  ;;  %v191_v0 = vld [vmem:[#allocation4 + $0x378] sm:$0xff] }
  0xae   :  { %1384 = vmatpush1.bf16.msra.mxu0 %v2549_v20  ;;  %1466 = vmatpush1.bf16.msra.mxu1 %v2551_v23  ;;  %v150_v20 = vld [vmem:[#allocation4 + $0x230] sm:$0xff]  ;;  %v2417_v23 = vcombine.low %v138_v10, %v142_v11  ;;  %v2467_v10 = vcombine.low %v187_v63, %v191_v0 }
  0xaf   :  { %1490 = vmatprep.subr.bf16.mxu0 %v2362_v25  ;;  %1572 = vmatprep.subr.bf16.mxu1 %v2364_v27  ;;  %v2419_v25 = vcombine.low %v139_v13, %v143_v14  ;;  %v2426_v26 = vcombine.high %v146_v19, %v150_v20  ;;  %v2428_v27 = vcombine.high %v147_v21, %v151_v22  ;;  %v202_v14 = vld [vmem:[#allocation4 + $0x3d0] sm:$0xff] }
  0xb1   :  { %1400 = vmatmul.mubr.bf16.vlgmr.msra.gmra.mrb[0].mxu0 %v3004_v28  ;;  %1482 = vmatmul.mubr.bf16.vlgmr.msra.gmra.mrb[0].mxu1 %v3004_v28 }
  0xb2   :  { %1491 = vmatpush1.bf16.msra.mxu0 %v2361_v30  ;;  %1573 = vmatpush1.bf16.msra.mxu1 %v2363_v33  ;;  %v158_v30 = vld [vmem:[#allocation4 + $0x270] sm:$0xff]  ;;  %v2425_v33 = vcombine.low %v146_v19, %v150_v20 }
  0xb3   :  { %1492 = vmatprep.subr.bf16.mxu0 %v2370_v34  ;;  %1574 = vmatprep.subr.bf16.mxu1 %v2372_v37  ;;  %v2427_v34 = vcombine.low %v147_v21, %v151_v22  ;;  %v2434_v35 = vcombine.high %v154_v29, %v158_v30  ;;  %v162_v37 = vld [vmem:[#allocation4 + $0x290] sm:$0xff] }
  0xb4   :  { %1522 = vmatprep.mubr.bf16.mxu0 %v2990_v57  ;;  %1604 = vmatprep.mubr.bf16.mxu1 %v2990_v57  ;;  %v2394_v57 = vcombine.high %v114_v47, %v118_v48  ;;  %v171_v47 = vld [vmem:[#allocation4 + $0x2d8] sm:$0xff]  ;;  %v210_v22 = vld [vmem:[#allocation4 + $0x410] sm:$0xff] }
  0xb5   :  { %v175_v48 = vld [vmem:[#allocation4 + $0x2f8] sm:$0xff] }
  0xb6   :  { %1493 = vmatpush1.bf16.msra.mxu0 %v2369_v38  ;;  %1575 = vmatpush1.bf16.msra.mxu1 %v2371_v41  ;;  %v166_v38 = vld [vmem:[#allocation4 + $0x2b0] sm:$0xff]  ;;  %v2433_v41 = vcombine.low %v154_v29, %v158_v30  ;;  %v2452_v52 = vcombine.high %v171_v47, %v175_v48 }
  0xb7   :  { %1494 = vmatprep.subr.bf16.mxu0 %v2378_v42  ;;  %1576 = vmatprep.subr.bf16.mxu1 %v2380_v45  ;;  %v2435_v42 = vcombine.low %v155_v31, %v159_v32  ;;  %v2442_v43 = vcombine.high %v162_v37, %v166_v38  ;;  %v170_v45 = vld [vmem:[#allocation4 + $0x2d0] sm:$0xff] }
  0xb8   :  { %v218_v32 = vld [vmem:[#allocation4 + $0x450] sm:$0xff] }
  0xba   :  { %1495 = vmatpush1.bf16.msra.mxu0 %v2377_v46  ;;  %1577 = vmatpush1.bf16.msra.mxu1 %v2379_v49  ;;  %v174_v46 = vld [vmem:[#allocation4 + $0x2f0] sm:$0xff]  ;;  %v2441_v49 = vcombine.low %v162_v37, %v166_v38 }
  0xbb   :  { %1496 = vmatprep.subr.bf16.mxu0 %v2386_v50  ;;  %1578 = vmatprep.subr.bf16.mxu1 %v2388_v53  ;;  %v2443_v50 = vcombine.low %v163_v39, %v167_v40  ;;  %v2450_v51 = vcombine.high %v170_v45, %v174_v46  ;;  %v178_v53 = vld [vmem:[#allocation4 + $0x310] sm:$0xff] }
  0xbc   :  { %v226_v40 = vld [vmem:[#allocation4 + $0x490] sm:$0xff] }
  0xbe   :  { %1497 = vmatpush1.bf16.msra.mxu0 %v2385_v54  ;;  %1579 = vmatpush1.bf16.msra.mxu1 %v2387_v58  ;;  %v182_v54 = vld [vmem:[#allocation4 + $0x330] sm:$0xff]  ;;  %v2449_v58 = vcombine.low %v170_v45, %v174_v46 }
  0xbf   :  { %1498 = vmatprep.subr.bf16.mxu0 %v2394_v57  ;;  %1580 = vmatprep.subr.bf16.mxu1 %v2396_v61  ;;  %v2451_v57 = vcombine.low %v171_v47, %v175_v48  ;;  %v2458_v59 = vcombine.high %v178_v53, %v182_v54  ;;  %v186_v61 = vld [vmem:[#allocation4 + $0x350] sm:$0xff] }
  0xc0   :  { %v234_v48 = vld [vmem:[#allocation4 + $0x4d0] sm:$0xff] }
  0xc2   :  { %1499 = vmatpush1.bf16.msra.mxu0 %v2393_v62  ;;  %1581 = vmatpush1.bf16.msra.mxu1 %v2395_v1  ;;  %v190_v62 = vld [vmem:[#allocation4 + $0x370] sm:$0xff]  ;;  %v2457_v1 = vcombine.low %v178_v53, %v182_v54 }
  0xc3   :  { %1500 = vmatprep.subr.bf16.mxu0 %v2402_v2  ;;  %1582 = vmatprep.subr.bf16.mxu1 %v2404_v4  ;;  %v2459_v2 = vcombine.low %v179_v55, %v183_v56  ;;  %v2466_v3 = vcombine.high %v186_v61, %v190_v62  ;;  %v2468_v4 = vcombine.high %v187_v63, %v191_v0  ;;  %v242_v55 = vld [vmem:[#allocation4 + $0x510] sm:$0xff]  ;;  %v251_v0 = vld [vmem:[#allocation4 + $0x558] sm:$0xff] }
  0xc4   :  { %v246_v56 = vld [vmem:[#allocation4 + $0x530] sm:$0xff] }
  0xc5   :  { %v254_v63 = vld [vmem:[#allocation4 + $0x570] sm:$0xff] }
  0xc6   :  { %1501 = vmatpush1.bf16.msra.mxu0 %v2401_v6  ;;  %1583 = vmatpush1.bf16.msra.mxu1 %v2403_v7  ;;  %v198_v6 = vld [vmem:[#allocation4 + $0x3b0] sm:$0xff]  ;;  %v195_v7 = vld [vmem:[#allocation4 + $0x398] sm:$0xff] }
  0xc7   :  { %1502 = vmatprep.subr.bf16.mxu0 %v2410_v8  ;;  %1584 = vmatprep.subr.bf16.mxu1 %v2412_v9  ;;  %v199_v8 = vld [vmem:[#allocation4 + $0x3b8] sm:$0xff]  ;;  %v2465_v9 = vcombine.low %v186_v61, %v190_v62  ;;  %v2474_v11 = vcombine.high %v194_v5, %v198_v6  ;;  %v2522_v61 = vcombine.high %v242_v55, %v246_v56  ;;  %v250_v62 = vld [vmem:[#allocation4 + $0x550] sm:$0xff] }
  0xc8   :  { %v2476_v13 = vcombine.high %v195_v7, %v199_v8  ;;  %v2475_v19 = vcombine.low %v195_v7, %v199_v8  ;;  %v262_v7 = vld [vmem:[#allocation4 + $0x5b0] sm:$0xff]  ;;  %v259_v8 = vld [vmem:[#allocation4 + $0x598] sm:$0xff] }
  0xca   :  { %1503 = vmatpush1.bf16.msra.mxu0 %v2409_v15  ;;  %1585 = vmatpush1.bf16.msra.mxu1 %v2411_v16  ;;  %v206_v15 = vld [vmem:[#allocation4 + $0x3f0] sm:$0xff]  ;;  %v203_v16 = vld [vmem:[#allocation4 + $0x3d8] sm:$0xff] }
  0xcb   :  { %1504 = vmatprep.subr.bf16.mxu0 %v2418_v17  ;;  %1586 = vmatprep.subr.bf16.mxu1 %v2420_v18  ;;  %v207_v17 = vld [vmem:[#allocation4 + $0x3f8] sm:$0xff]  ;;  %v2473_v18 = vcombine.low %v194_v5, %v198_v6  ;;  %v2482_v20 = vcombine.high %v202_v14, %v206_v15  ;;  %v258_v6 = vld [vmem:[#allocation4 + $0x590] sm:$0xff] }
  0xcc   :  { %v2484_v21 = vcombine.high %v203_v16, %v207_v17  ;;  %v2483_v29 = vcombine.low %v203_v16, %v207_v17  ;;  %v270_v16 = vld [vmem:[#allocation4 + $0x5f0] sm:$0xff]  ;;  %v267_v17 = vld [vmem:[#allocation4 + $0x5d8] sm:$0xff] }
  0xce   :  { %1505 = vmatpush1.bf16.msra.mxu0 %v2417_v23  ;;  %1587 = vmatpush1.bf16.msra.mxu1 %v2419_v25  ;;  %v214_v23 = vld [vmem:[#allocation4 + $0x430] sm:$0xff]  ;;  %v211_v25 = vld [vmem:[#allocation4 + $0x418] sm:$0xff] }
  0xcf   :  { %1506 = vmatprep.subr.bf16.mxu0 %v2426_v26  ;;  %1588 = vmatprep.subr.bf16.mxu1 %v2428_v27  ;;  %v215_v26 = vld [vmem:[#allocation4 + $0x438] sm:$0xff]  ;;  %v2481_v27 = vcombine.low %v202_v14, %v206_v15  ;;  %v2490_v30 = vcombine.high %v210_v22, %v214_v23  ;;  %v266_v15 = vld [vmem:[#allocation4 + $0x5d0] sm:$0xff] }
  0xd0   :  { %v2492_v31 = vcombine.high %v211_v25, %v215_v26  ;;  %v2491_v37 = vcombine.low %v211_v25, %v215_v26  ;;  %v278_v25 = vld [vmem:[#allocation4 + $0x630] sm:$0xff]  ;;  %v275_v26 = vld [vmem:[#allocation4 + $0x618] sm:$0xff] }
  0xd2   :  { %1507 = vmatpush1.bf16.msra.mxu0 %v2425_v33  ;;  %1589 = vmatpush1.bf16.msra.mxu1 %v2427_v34  ;;  %v222_v33 = vld [vmem:[#allocation4 + $0x470] sm:$0xff]  ;;  %v219_v34 = vld [vmem:[#allocation4 + $0x458] sm:$0xff] }
  0xd3   :  { %1508 = vmatprep.subr.bf16.mxu0 %v2434_v35  ;;  %1590 = vmatprep.subr.bf16.mxu1 %v2436_v36  ;;  %v223_v35 = vld [vmem:[#allocation4 + $0x478] sm:$0xff]  ;;  %v2489_v36 = vcombine.low %v210_v22, %v214_v23  ;;  %v2498_v38 = vcombine.high %v218_v32, %v222_v33  ;;  %v274_v23 = vld [vmem:[#allocation4 + $0x610] sm:$0xff] }
  0xd4   :  { %v2500_v39 = vcombine.high %v219_v34, %v223_v35  ;;  %v2499_v45 = vcombine.low %v219_v34, %v223_v35  ;;  %v2746_v35 = vld [vmem:[#allocation7 + $0x40] sm:$0xff]  }
  0xd6   :  { %1509 = vmatpush1.bf16.msra.mxu0 %v2433_v41  ;;  %1591 = vmatpush1.bf16.msra.mxu1 %v2435_v42  ;;  %v230_v41 = vld [vmem:[#allocation4 + $0x4b0] sm:$0xff]  ;;  %v227_v42 = vld [vmem:[#allocation4 + $0x498] sm:$0xff] }
  0xd7   :  { %1510 = vmatprep.subr.bf16.mxu0 %v2442_v43  ;;  %1592 = vmatprep.subr.bf16.mxu1 %v2444_v44  ;;  %v231_v43 = vld [vmem:[#allocation4 + $0x4b8] sm:$0xff]  ;;  %v2497_v44 = vcombine.low %v218_v32, %v222_v33  ;;  %v2506_v46 = vcombine.high %v226_v40, %v230_v41  ;;  %v2553_v33 = vcombine.low %v274_v23, %v278_v25 }
  0xd8   :  { %v2508_v47 = vcombine.high %v227_v42, %v231_v43 }
  0xda   :  { %1511 = vmatpush1.bf16.msra.mxu0 %v2441_v49  ;;  %1593 = vmatpush1.bf16.msra.mxu1 %v2443_v50  ;;  %v238_v49 = vld [vmem:[#allocation4 + $0x4f0] sm:$0xff]  ;;  %v235_v50 = vld [vmem:[#allocation4 + $0x4d8] sm:$0xff] }
  0xdb   :  { %1512 = vmatprep.subr.bf16.mxu0 %v2450_v51  ;;  %1594 = vmatprep.subr.bf16.mxu1 %v2452_v52  ;;  %v239_v51 = vld [vmem:[#allocation4 + $0x4f8] sm:$0xff]  ;;  %v2505_v52 = vcombine.low %v226_v40, %v230_v41  ;;  %v2514_v53 = vcombine.high %v234_v48, %v238_v49  ;;  %v2751_v40 = vld [vmem:[#allocation7 + $0xc8] sm:$0xff]  }
  0xdc   :  { %v2516_v54 = vcombine.high %v235_v50, %v239_v51  ;;  %v2752_v41 = vld [vmem:[#allocation7 + $0x8] sm:$0xff]  }
  0xde   :  { %1513 = vmatpush1.bf16.msra.mxu0 %v2449_v58  ;;  %1595 = vmatpush1.bf16.msra.mxu1 %v2451_v57  ;;  %v243_v58 = vld [vmem:[#allocation4 + $0x518] sm:$0xff] }
  0xdf   :  { %1514 = vmatprep.subr.bf16.mxu0 %v2458_v59  ;;  %1596 = vmatprep.subr.bf16.mxu1 %v2460_v60  ;;  %v247_v57 = vld [vmem:[#allocation4 + $0x538] sm:$0xff]  ;;  %v2513_v59 = vcombine.low %v234_v48, %v238_v49  ;;  %v2515_v60 = vcombine.low %v235_v50, %v239_v51  ;;  %v2759_v48 = vld [vmem:[#allocation7 + $0xd8] sm:$0xff]   ;;  %v2762_v50 = vld [vmem:[#allocation7 + $0x60] sm:$0xff]  }
  0xe0   :  { %v2760_v49 = vld [vmem:[#allocation7 + $0x18] sm:$0xff]   ;;  %v2763_v51 = vld [vmem:[#allocation7 + $0xe0] sm:$0xff]  }
  0xe2   :  { %1515 = vmatpush1.bf16.msra.mxu0 %v2457_v1  ;;  %1597 = vmatpush1.bf16.msra.mxu1 %v2459_v2  ;;  %v255_v1 = vld [vmem:[#allocation4 + $0x578] sm:$0xff]  ;;  %v2521_v2 = vcombine.low %v242_v55, %v246_v56  ;;  %v2768_v55 = vld [vmem:[#allocation7 + $0x28] sm:$0xff]  }
  0xe3   :  { %1516 = vmatprep.subr.bf16.mxu0 %v2466_v3  ;;  %1598 = vmatprep.subr.bf16.mxu1 %v2468_v4  ;;  %v2523_v3 = vcombine.low %v243_v58, %v247_v57  ;;  %v2530_v4 = vcombine.high %v250_v62, %v254_v63  ;;  %v2532_v5 = vcombine.high %v251_v0, %v255_v1  ;;  %v2769_v56 = vld [vmem:[#allocation7 + $0xa8] sm:$0xff]  }
  0xe6   :  { %1517 = vmatpush1.bf16.msra.mxu0 %v2465_v9  ;;  %1599 = vmatpush1.bf16.msra.mxu1 %v2467_v10  ;;  %v263_v9 = vld [vmem:[#allocation4 + $0x5b8] sm:$0xff]  ;;  %v2529_v10 = vcombine.low %v250_v62, %v254_v63  ;;  %v2776_v62 = vld [vmem:[#allocation7 + $0x38] sm:$0xff]  }
  0xe7   :  { %1518 = vmatprep.subr.bf16.mxu0 %v2474_v11  ;;  %1600 = vmatprep.subr.bf16.mxu1 %v2476_v13  ;;  %v2531_v11 = vcombine.low %v251_v0, %v255_v1  ;;  %v2538_v13 = vcombine.high %v258_v6, %v262_v7  ;;  %v2540_v14 = vcombine.high %v259_v8, %v263_v9  ;;  %v2777_v63 = vld [vmem:[#allocation7 + $0xb8] sm:$0xff]   ;;  %v2778_v0 = vld [vmem:[#allocation7 + $0x140] sm:$0xff]  }
  0xe8   :  { %v2779_v1 = vld [vmem:[#allocation7 + $0x1c0] sm:$0xff]  }
  0xea   :  { %1519 = vmatpush1.bf16.msra.mxu0 %v2473_v18  ;;  %1601 = vmatpush1.bf16.msra.mxu1 %v2475_v19  ;;  %v271_v18 = vld [vmem:[#allocation4 + $0x5f8] sm:$0xff]  ;;  %v2537_v19 = vcombine.low %v258_v6, %v262_v7 }
  0xeb   :  { %1520 = vmatprep.subr.bf16.mxu0 %v2482_v20  ;;  %1602 = vmatprep.subr.bf16.mxu1 %v2484_v21  ;;  %v2539_v20 = vcombine.low %v259_v8, %v263_v9  ;;  %v2546_v21 = vcombine.high %v266_v15, %v270_v16  ;;  %v2548_v22 = vcombine.high %v267_v17, %v271_v18 }
  0xee   :  { %1521 = vmatpush1.bf16.msra.mxu0 %v2481_v27  ;;  %1603 = vmatpush1.bf16.msra.mxu1 %v2483_v29  ;;  %v279_v27 = vld [vmem:[#allocation4 + $0x638] sm:$0xff]  ;;  %v2545_v29 = vcombine.low %v266_v15, %v270_v16 }
  0xef   :  { %1531 = vmatprep.subr.bf16.mxu0 %v2490_v30  ;;  %1613 = vmatprep.subr.bf16.mxu1 %v2492_v31  ;;  %v2547_v30 = vcombine.low %v267_v17, %v271_v18  ;;  %v2554_v31 = vcombine.high %v274_v23, %v278_v25  ;;  %v2556_v32 = vcombine.high %v275_v26, %v279_v27 }
  0xf0   :  { %v2555_v34 = vcombine.low %v275_v26, %v279_v27 }
  0xf1   :  { %1523 = vmatmul.mubr.bf16.vlgmr.msra.gmra.mrb[4].mxu0 %v2994_v12  ;;  %1605 = vmatmul.mubr.bf16.vlgmr.msra.gmra.mrb[4].mxu1 %v2994_v12  ;;  %v2507_v12 = vcombine.low %v227_v42, %v231_v43  ;;  %v2753_v42 = vld [vmem:[#allocation7 + $0x88] sm:$0xff]   ;;  %v2754_v43 = vld [vmem:[#allocation7 + $0x50] sm:$0xff]  }
  0xf2   :  { %1532 = vmatpush1.bf16.msra.mxu0 %v2489_v36  ;;  %1614 = vmatpush1.bf16.msra.mxu1 %v2491_v37  ;;  %v2747_v36 = vld [vmem:[#allocation7 + $0xc0] sm:$0xff]  }
  0xf3   :  { %1533 = vmatprep.subr.bf16.mxu0 %v2498_v38  ;;  %1615 = vmatprep.subr.bf16.mxu1 %v2500_v39  ;;  %v2748_v37 = vld [vmem:[#allocation7] sm:$0xff]   ;;  %v2750_v39 = vld [vmem:[#allocation7 + $0x48] sm:$0xff]  }
  0xf4   :  { %2559 = vmatprep.mubr.msk.bf16.mxu0 %vm1322_vm0, %v2996_v24  ;;  %2560 = vmatprep.mubr.msk.bf16.mxu1 %vm1322_vm0, %v2996_v24  ;;  %v2524_v24 = vcombine.high %v243_v58, %v247_v57  ;;  %v2749_v38 = vld [vmem:[#allocation7 + $0x80] sm:$0xff]   ;;  %v2770_v58 = vld [vmem:[#allocation7 + $0x70] sm:$0xff]  }
  0xf5   :  { %v2771_v57 = vld [vmem:[#allocation7 + $0xf0] sm:$0xff]  }
  0xf6   :  { %1534 = vmatpush1.bf16.msra.mxu0 %v2497_v44  ;;  %1616 = vmatpush1.bf16.msra.mxu1 %v2499_v45  ;;  %v2755_v44 = vld [vmem:[#allocation7 + $0xd0] sm:$0xff]  }
  0xf7   :  { %1535 = vmatprep.subr.bf16.mxu0 %v2506_v46  ;;  %1617 = vmatprep.subr.bf16.mxu1 %v2508_v47  ;;  %v2756_v45 = vld [vmem:[#allocation7 + $0x10] sm:$0xff]   ;;  %v2758_v47 = vld [vmem:[#allocation7 + $0x58] sm:$0xff]  }
  0xf8   :  { %v2757_v46 = vld [vmem:[#allocation7 + $0x90] sm:$0xff]  }
  0xfa   :  { %1536 = vmatpush1.bf16.msra.mxu0 %v2505_v52  ;;  %1618 = vmatpush1.bf16.msra.mxu1 %v2507_v12  ;;  %v2764_v52 = vld [vmem:[#allocation7 + $0x20] sm:$0xff]  }
  0xfb   :  { %1537 = vmatprep.subr.bf16.mxu0 %v2514_v53  ;;  %1619 = vmatprep.subr.bf16.mxu1 %v2516_v54  ;;  %v2765_v12 = vld [vmem:[#allocation7 + $0xa0] sm:$0xff]   ;;  %v2766_v53 = vld [vmem:[#allocation7 + $0x68] sm:$0xff]  }
  0xfc   :  { %v2767_v54 = vld [vmem:[#allocation7 + $0xe8] sm:$0xff]  }
  0xfe   :  { %1538 = vmatpush1.bf16.msra.mxu0 %v2513_v59  ;;  %1620 = vmatpush1.bf16.msra.mxu1 %v2515_v60  ;;  %v2772_v59 = vld [vmem:[#allocation7 + $0x30] sm:$0xff]  }
  0xff   :  { %1539 = vmatprep.subr.bf16.mxu0 %v2522_v61  ;;  %1621 = vmatprep.subr.bf16.mxu1 %v2524_v24  ;;  %v2773_v60 = vld [vmem:[#allocation7 + $0xb0] sm:$0xff]   ;;  %v2774_v61 = vld [vmem:[#allocation7 + $0x78] sm:$0xff]  }
 0x100   :  { %v2775_v24 = vld [vmem:[#allocation7 + $0xf8] sm:$0xff]  }
 0x102   :  { %1540 = vmatpush1.bf16.msra.mxu0 %v2521_v2  ;;  %1622 = vmatpush1.bf16.msra.mxu1 %v2523_v3  ;;  %v282_v2 = vlaneseq }
 0x103   :  { %1541 = vmatprep.subr.bf16.mxu0 %v2530_v4  ;;  %1623 = vmatprep.subr.bf16.mxu1 %v2532_v5  ;;  %v3021_v5 = vld [vmem:[#allocation6] sm:$0xff] }
 0x104   :  { %v3018_v3 = vshrl.u32 %v282_v2, 7 }
 0x106   :  { %1542 = vmatpush1.bf16.msra.mxu0 %v2529_v10  ;;  %1624 = vmatpush1.bf16.msra.mxu1 %v2531_v11  ;;  %v284_v4 = vsub.s32 0, %v3018_v3  ;;  %v292_v6 = vsub.s32 2, %v3018_v3  ;;  %v288_v7 = vsub.s32 1, %v3018_v3  ;;  %v296_v8 = vsub.s32 3, %v3018_v3 }
 0x107   :  { %1543 = vmatprep.subr.bf16.mxu0 %v2538_v13  ;;  %1625 = vmatprep.subr.bf16.mxu1 %v2540_v14  ;;  %v312_v2 = vsub.s32 7, %v3018_v3 }
 0x108   :  { %v285_v9 = vrot.slane %v3021_v5, %v284_v4  ;;  %v293_v10 = vrot.slane %v3021_v5, %v292_v6  ;;  %v289_v11 = vrot.slane %v3021_v5, %v288_v7  ;;  %v297_v13 = vrot.slane %v3021_v5, %v296_v8 }
 0x109   :  { %v313_v8 = vrot.slane %v3021_v5, %v312_v2 }
 0x10a   :  { %1544 = vmatpush1.bf16.msra.mxu0 %v2537_v19  ;;  %1626 = vmatpush1.bf16.msra.mxu1 %v2539_v20 }
 0x10b   :  { %1545 = vmatprep.subr.bf16.mxu0 %v2546_v21  ;;  %1627 = vmatprep.subr.bf16.mxu1 %v2548_v22 }
 0x10e   :  { %1546 = vmatpush1.bf16.msra.mxu0 %v2545_v29  ;;  %1628 = vmatpush1.bf16.msra.mxu1 %v2547_v30 }
 0x10f   :  { %1547 = vmatprep.subr.bf16.mxu0 %v2554_v31  ;;  %1629 = vmatprep.subr.bf16.mxu1 %v2556_v32 }
 0x112   :  { %1548 = vmatpush1.bf16.msra.mxu0 %v2553_v33  ;;  %1630 = vmatpush1.bf16.msra.mxu1 %v2555_v34  ;;  %v2780_v33 = vld [vmem:[#allocation7 + $0x100] sm:$0xff]  }
 0x113   :  { %2626 = vmatprep.subr.bf16.mxu0 %v2746_v35  ;;  %2648 = vmatprep.subr.bf16.mxu1 %v2747_v36  ;;  %v2781_v36 = vld [vmem:[#allocation7 + $0x180] sm:$0xff]  }
 0x115   :  { %1564 = vmatmul.mubr.bf16.vlgmr.msra.gmra.mrb[4].mxu0 %v3004_v28  ;;  %1646 = vmatmul.mubr.bf16.vlgmr.msra.gmra.mrb[4].mxu1 %v3004_v28  ;;  %v2761_v28 = vld [vmem:[#allocation7 + $0x98] sm:$0xff]  }
 0x116   :  { %2627 = vmatpush3.bf16.msra.mxu0 %v2748_v37  ;;  %2649 = vmatpush3.bf16.msra.mxu1 %v2749_v38  ;;  %v2782_v37 = vld [vmem:[#allocation7 + $0x148] sm:$0xff]  }
 0x117   :  { %2628 = vmatprep.subr.bf16.mxu0 %v2750_v39  ;;  %2650 = vmatprep.subr.bf16.mxu1 %v2751_v40  ;;  %v2783_v39 = vld [vmem:[#allocation7 + $0x1c8] sm:$0xff]  }
 0x118   :  { %v2784_v40 = vld [vmem:[#allocation7 + $0x108] sm:$0xff]  }
 0x11a   :  { %2629 = vmatpush3.bf16.msra.mxu0 %v2752_v41  ;;  %2651 = vmatpush3.bf16.msra.mxu1 %v2753_v42  ;;  %v2785_v41 = vld [vmem:[#allocation7 + $0x188] sm:$0xff]   ;;  %v2786_v42 = vld [vmem:[#allocation7 + $0x150] sm:$0xff]  }
 0x11b   :  { %2630 = vmatprep.subr.bf16.mxu0 %v2754_v43  ;;  %2652 = vmatprep.subr.bf16.mxu1 %v2755_v44  ;;  %v2787_v43 = vld [vmem:[#allocation7 + $0x1d0] sm:$0xff]  }
 0x11c   :  { %v2788_v44 = vld [vmem:[#allocation7 + $0x110] sm:$0xff]  }
 0x11e   :  { %2631 = vmatpush3.bf16.msra.mxu0 %v2756_v45  ;;  %2653 = vmatpush3.bf16.msra.mxu1 %v2757_v46  ;;  %v2789_v45 = vld [vmem:[#allocation7 + $0x190] sm:$0xff]   ;;  %v2790_v46 = vld [vmem:[#allocation7 + $0x158] sm:$0xff]  }
 0x11f   :  { %2632 = vmatprep.subr.bf16.mxu0 %v2758_v47  ;;  %2654 = vmatprep.subr.bf16.mxu1 %v2759_v48  ;;  %v2791_v47 = vld [vmem:[#allocation7 + $0x1d8] sm:$0xff]  }
 0x120   :  { %v2792_v48 = vld [vmem:[#allocation7 + $0x118] sm:$0xff]  }
 0x122   :  { %2633 = vmatpush3.bf16.msra.mxu0 %v2760_v49  ;;  %2655 = vmatpush3.bf16.msra.mxu1 %v2761_v28  ;;  %v2793_v49 = vld [vmem:[#allocation7 + $0x198] sm:$0xff]   ;;  %v2794_v28 = vld [vmem:[#allocation7 + $0x160] sm:$0xff]  }
 0x123   :  { %2634 = vmatprep.subr.bf16.mxu0 %v2762_v50  ;;  %2656 = vmatprep.subr.bf16.mxu1 %v2763_v51  ;;  %v2795_v50 = vld [vmem:[#allocation7 + $0x1e0] sm:$0xff]  }
 0x124   :  { %v2796_v51 = vld [vmem:[#allocation7 + $0x120] sm:$0xff]  }
 0x126   :  { %2635 = vmatpush3.bf16.msra.mxu0 %v2764_v52  ;;  %2657 = vmatpush3.bf16.msra.mxu1 %v2765_v12  ;;  %v2797_v52 = vld [vmem:[#allocation7 + $0x1a0] sm:$0xff]   ;;  %v2798_v12 = vld [vmem:[#allocation7 + $0x168] sm:$0xff]  }
 0x127   :  { %2636 = vmatprep.subr.bf16.mxu0 %v2766_v53  ;;  %2658 = vmatprep.subr.bf16.mxu1 %v2767_v54  ;;  %v2799_v53 = vld [vmem:[#allocation7 + $0x1e8] sm:$0xff]  }
 0x128   :  { %v2800_v54 = vld [vmem:[#allocation7 + $0x128] sm:$0xff]  }
 0x12a   :  { %2637 = vmatpush3.bf16.msra.mxu0 %v2768_v55  ;;  %2659 = vmatpush3.bf16.msra.mxu1 %v2769_v56  ;;  %v2801_v55 = vld [vmem:[#allocation7 + $0x1a8] sm:$0xff]   ;;  %v2802_v56 = vld [vmem:[#allocation7 + $0x170] sm:$0xff]  }
 0x12b   :  { %2638 = vmatprep.subr.bf16.mxu0 %v2770_v58  ;;  %2660 = vmatprep.subr.bf16.mxu1 %v2771_v57  ;;  %v2803_v58 = vld [vmem:[#allocation7 + $0x1f0] sm:$0xff]  }
 0x12c   :  { %v2804_v57 = vld [vmem:[#allocation7 + $0x130] sm:$0xff]  }
 0x12e   :  { %2639 = vmatpush3.bf16.msra.mxu0 %v2772_v59  ;;  %2661 = vmatpush3.bf16.msra.mxu1 %v2773_v60  ;;  %v2805_v59 = vld [vmem:[#allocation7 + $0x1b0] sm:$0xff]   ;;  %v2806_v60 = vld [vmem:[#allocation7 + $0x178] sm:$0xff]  }
 0x12f   :  { %2640 = vmatprep.subr.bf16.mxu0 %v2774_v61  ;;  %2662 = vmatprep.subr.bf16.mxu1 %v2775_v24  ;;  %v2807_v61 = vld [vmem:[#allocation7 + $0x1f8] sm:$0xff]  }
 0x130   :  { %v2808_v24 = vld [vmem:[#allocation7 + $0x138] sm:$0xff]  }
 0x132   :  { %2641 = vmatpush3.bf16.msra.mxu0 %v2776_v62  ;;  %2663 = vmatpush3.bf16.msra.mxu1 %v2777_v63  ;;  %v2809_v62 = vld [vmem:[#allocation7 + $0x1b8] sm:$0xff]   ;;  %v300_v63 = vsub.s32 4, %v3018_v3 }
 0x133   :  { %2670 = vmatprep.subr.bf16.mxu0 %v2778_v0  ;;  %2692 = vmatprep.subr.bf16.mxu1 %v2779_v1  ;;  %v308_v0 = vsub.s32 6, %v3018_v3  ;;  %v304_v1 = vsub.s32 5, %v3018_v3 }
 0x134   :  { %v301_v4 = vrot.slane %v3021_v5, %v300_v63 }
 0x135   :  { %v309_v6 = vrot.slane %v3021_v5, %v308_v0  ;;  %v305_v7 = vrot.slane %v3021_v5, %v304_v1 }
 0x184   :  { %v1401_v14 = vpop.f32.mrb[0].mxu0  ;;  %v1483_v16 = vpop.f32.mrb[0].mxu1 }
 0x185   :  { %v2714_v15 = vadd.f32 %v1401_v14, %v285_v9  ;;  %v1403_v17 = vpop.f32.mrb[1].mxu0  ;;  %v2716_v18 = vadd.f32 %v1483_v16, %v293_v10  ;;  %v1485_v20 = vpop.f32.mrb[1].mxu1 }
 0x186   :  { %v2715_v19 = vadd.f32 %v1403_v17, %v289_v11  ;;  %v1405_v21 = vpop.f32.mrb[2].mxu0  ;;  %v2717_v23 = vadd.f32 %v1485_v20, %v297_v13  ;;  %v1487_v25 = vpop.f32.mrb[2].mxu1 }
 0x187   :  { %v1654_v22 = vmax.f32 %v2714_v15, 0.0  ;;  %v1406_v26 = vpop.f32.mrb[3].mxu0  ;;  %v1656_v27 = vmax.f32 %v2716_v18, 0.0  ;;  %v1488_v30 = vpop.f32.mrb[3].mxu1 }
 0x188   :  { %v1655_v29 = vmax.f32 %v2715_v19, 0.0  ;;  %v1657_v31 = vmax.f32 %v2717_v23, 0.0 }
 0x189   :  { %v1662_v34 = vpack.c.bf16 %v1654_v22, %v1654_v22  ;;  %v1664_v38 = vpack.c.bf16 %v1656_v27, %v1656_v27 }
 0x18a   :  { %v1663_v32 = vpack.c.bf16 %v1655_v29, %v1655_v29  ;;  %v1665_v35 = vpack.c.bf16 %v1657_v31, %v1657_v31 }
 0x18c   :  { %2221 = vmatprep.mubr.bf16.mxu0 %v1663_v32  ;;  %2261 = vmatprep.mubr.bf16.mxu1 %v1665_v35  ;;  %v2561_v32 = vld [vmem:[%s3048_s4] ss:$0 sm:$0xff] }
 0x18d   :  { %2222 = vmatmul.mubr.bf16.vlgmr.msra.gmra.mrb[8].mxu0 %v1662_v34  ;;  %2262 = vmatmul.mubr.bf16.vlgmr.msra.gmra.mrb[8].mxu1 %v1664_v38 }
 0x18e   :  { %2671 = vmatpush3.bf16.msra.mxu0 %v2780_v33  ;;  %2693 = vmatpush3.bf16.msra.mxu1 %v2781_v36 }
 0x18f   :  { %2672 = vmatprep.subr.bf16.mxu0 %v2782_v37  ;;  %2694 = vmatprep.subr.bf16.mxu1 %v2783_v39 }
 0x192   :  { %2673 = vmatpush3.bf16.msra.mxu0 %v2784_v40  ;;  %2695 = vmatpush3.bf16.msra.mxu1 %v2785_v41 }
 0x193   :  { %2674 = vmatprep.subr.bf16.mxu0 %v2786_v42  ;;  %2696 = vmatprep.subr.bf16.mxu1 %v2787_v43 }
 0x196   :  { %2675 = vmatpush3.bf16.msra.mxu0 %v2788_v44  ;;  %2697 = vmatpush3.bf16.msra.mxu1 %v2789_v45 }
 0x197   :  { %2676 = vmatprep.subr.bf16.mxu0 %v2790_v46  ;;  %2698 = vmatprep.subr.bf16.mxu1 %v2791_v47 }
 0x19a   :  { %2677 = vmatpush3.bf16.msra.mxu0 %v2792_v48  ;;  %2699 = vmatpush3.bf16.msra.mxu1 %v2793_v49 }
 0x19b   :  { %2678 = vmatprep.subr.bf16.mxu0 %v2794_v28  ;;  %2700 = vmatprep.subr.bf16.mxu1 %v2795_v50 }
 0x19e   :  { %2679 = vmatpush3.bf16.msra.mxu0 %v2796_v51  ;;  %2701 = vmatpush3.bf16.msra.mxu1 %v2797_v52 }
 0x19f   :  { %2680 = vmatprep.subr.bf16.mxu0 %v2798_v12  ;;  %2702 = vmatprep.subr.bf16.mxu1 %v2799_v53 }
 0x1a2   :  { %2681 = vmatpush3.bf16.msra.mxu0 %v2800_v54  ;;  %2703 = vmatpush3.bf16.msra.mxu1 %v2801_v55 }
 0x1a3   :  { %2682 = vmatprep.subr.bf16.mxu0 %v2802_v56  ;;  %2704 = vmatprep.subr.bf16.mxu1 %v2803_v58 }
 0x1a6   :  { %2683 = vmatpush3.bf16.msra.mxu0 %v2804_v57  ;;  %2705 = vmatpush3.bf16.msra.mxu1 %v2805_v59 }
 0x1a7   :  { %2684 = vmatprep.subr.bf16.mxu0 %v2806_v60  ;;  %2706 = vmatprep.subr.bf16.mxu1 %v2807_v61 }
 0x1aa   :  { %2685 = vmatpush3.bf16.msra.mxu0 %v2808_v24  ;;  %2707 = vmatpush3.bf16.msra.mxu1 %v2809_v62 }
 0x1e8   :  { %v1565_v9 = vpop.f32.mrb[4].mxu0  ;;  %v1647_v11 = vpop.f32.mrb[4].mxu1 }
 0x1e9   :  { %v2718_v10 = vadd.f32 %v1565_v9, %v301_v4  ;;  %v1567_v13 = vpop.f32.mrb[5].mxu0  ;;  %v2720_v14 = vadd.f32 %v1647_v11, %v309_v6  ;;  %v1649_v16 = vpop.f32.mrb[5].mxu1 }
 0x1ea   :  { %v2719_v15 = vadd.f32 %v1567_v13, %v305_v7  ;;  %v1569_v17 = vpop.f32.mrb[6].mxu0  ;;  %v2721_v19 = vadd.f32 %v1649_v16, %v313_v8  ;;  %v1651_v20 = vpop.f32.mrb[6].mxu1 }
 0x1eb   :  { %v1658_v18 = vmax.f32 %v2718_v10, 0.0  ;;  %v1570_v3 = vpop.f32.mrb[7].mxu0  ;;  %v1660_v21 = vmax.f32 %v2720_v14, 0.0  ;;  %v1652_v23 = vpop.f32.mrb[7].mxu1 }
 0x1ec   :  { %v1659_v22 = vmax.f32 %v2719_v15, 0.0  ;;  %v1661_v25 = vmax.f32 %v2721_v19, 0.0 }
 0x1ed   :  { %v1666_v27 = vpack.c.bf16 %v1658_v18, %v1658_v18  ;;  %v1668_v5 = vpack.c.bf16 %v1660_v21, %v1660_v21 }
 0x1ee   :  { %v1667_v26 = vpack.c.bf16 %v1659_v22, %v1659_v22  ;;  %v1669_v29 = vpack.c.bf16 %v1661_v25, %v1661_v25 }
 0x1f0   :  { %2301 = vmatprep.mubr.bf16.mxu0 %v1667_v26  ;;  %2341 = vmatprep.mubr.bf16.mxu1 %v1669_v29 }
 0x1f1   :  { %2302 = vmatmul.mubr.bf16.vlgmr.msra.gmra.mrb[12].mxu0 %v1666_v27  ;;  %2342 = vmatmul.mubr.bf16.vlgmr.msra.gmra.mrb[12].mxu1 %v1668_v5 }
 0x260   :  { %v2642_v30 = vpop.f32.mrb[8].mxu0  ;;  %v2664_v31 = vpop.f32.mrb[8].mxu1 }
 0x261   :  { %v2643_v33 = vpop.f32.mrb[9].mxu0  ;;  %v2665_v35 = vpop.f32.mrb[9].mxu1 }
 0x262   :  { %v2644_v34 = vadd.f32 %v2643_v33, %v2642_v30  ;;  %v2645_v36 = vpop.f32.mrb[10].mxu0  ;;  %v2666_v37 = vadd.f32 %v2665_v35, %v2664_v31  ;;  %v2667_v38 = vpop.f32.mrb[10].mxu1 }
 0x263   :  { %v2646_v39 = vpop.f32.mrb[11].mxu0  ;;  %v2668_v41 = vpop.f32.mrb[11].mxu1 }
 0x264   :  { %v2224_v40 = vadd.f32 %v2644_v34, %v2561_v32 }
 0x266   :  { %v2264_v42 = vadd.f32 %v2666_v37, %v2224_v40 }
 0x2c4   :  { %v2686_v43 = vpop.f32.mrb[12].mxu0  ;;  %v2708_v44 = vpop.f32.mrb[12].mxu1 }
 0x2c5   :  { %v2687_v45 = vpop.f32.mrb[13].mxu0  ;;  %v2709_v47 = vpop.f32.mrb[13].mxu1 }
 0x2c6   :  { %v2688_v46 = vadd.f32 %v2687_v45, %v2686_v43  ;;  %v2689_v48 = vpop.f32.mrb[14].mxu0  ;;  %v2710_v49 = vadd.f32 %v2709_v47, %v2708_v44  ;;  %v2711_v28 = vpop.f32.mrb[14].mxu1 }
 0x2c7   :  { %v2690_v50 = vpop.f32.mrb[15].mxu0  ;;  %v2712_v52 = vpop.f32.mrb[15].mxu1 }
 0x2c8   :  { %v2304_v51 = vadd.f32 %v2688_v46, %v2264_v42 }
 0x2ca   :  { %v2344_v12 = vadd.f32 %v2710_v49, %v2304_v51 }
 0x2cc   :  { %2349 = vst [vmem:[%s3049_s5] sm:$0xff] %v2344_v12 }
 0x2cd   :  { %2354 = vsyncpa [#allocation3], 1 }
 0x2ce   :  { %2355 = vsyncpa [#allocation5], 1 }
 0x2cf   :  { %2356 = vsyncpa [#allocation8], 1 }

</bundles_post_ra>
